<compile_context>
chip_gen: v7x
topology: tpu7x:2x2x1
jax: 0.10.0
libtpu: 0.0.40
codegen_flags: <defaults>
</compile_context>

<pallas_src>
import functools

import jax
import jax.numpy as jnp
import numpy as np
from jax import lax
from jax.experimental import pallas as pl
from jax.experimental.pallas import tpu as pltpu

INPUT_SIZE = 11
HIDDEN = 50
OUT = 4

GW = 128    # per-gate lane strip width (lane-aligned gates, clean vreg views)
HP = 128    # padded hidden width (one full vreg of lanes)
OUTP = 128  # padded output width (lane-dense final store)

# Strip order [i, f, o, g]: the 3 sigmoid gates contiguous, tanh gate last.
# PyTorch row order in w_ih/w_hh is [i, f, g, o]  ->  source index per strip:
_GATE_SRC = (0, 1, 3, 2)
# Sigmoid strips pre-scaled by 0.5 so the kernel needs only tanh (sigmoid(x)=0.5*(tanh(x/2)+1)).
_GATE_SCALE = (0.5, 0.5, 0.5, 1.0)


def pack_params(params):
    """One-time weight packing (hoisted out of the per-call path; cache the result)."""
    w_ih, w_hh, b_ih, b_hh, w_lin, b_lin = params
    f32 = jnp.float32
    H, I = HIDDEN, INPUT_SIZE
    bias = (b_ih + b_hh).astype(f32)

    wih_p = jnp.zeros((I, 4 * GW), f32)             # (11, 512)
    whh_p = jnp.zeros((HP, 4 * GW), f32)            # (128, 512), rows >= H are zero
    b_p = jnp.zeros((1, 4 * GW), f32)               # combined bias, zero in padded lanes
    for s in range(4):
        g, sc = _GATE_SRC[s], _GATE_SCALE[s]
        wih_p = wih_p.at[:, s * GW:s * GW + H].set(
            sc * jnp.transpose(w_ih[g * H:(g + 1) * H, :]).astype(f32))
        whh_p = whh_p.at[:H, s * GW:s * GW + H].set(
            sc * jnp.transpose(w_hh[g * H:(g + 1) * H, :]).astype(f32))
        b_p = b_p.at[0, s * GW:s * GW + H].set(sc * bias[g * H:(g + 1) * H])

    wlin_p = jnp.zeros((HP, OUTP), f32).at[:H, :OUT].set(jnp.transpose(w_lin).astype(f32))
    blin_p = jnp.zeros((1, OUTP), f32).at[0, :OUT].set(b_lin.astype(f32))

    return tuple(jax.device_put(a) for a in (wih_p, whh_p, b_p, wlin_p, blin_p))


def _lstm_kernel(x_ref, wih_ref, whh_ref, b_ref, wlin_ref, blin_ref,
                 out_ref, gx_ref, hall_ref, *, T, BP):
    # 1) Input projection for ALL timesteps in one GEMM (no sequential dependence).
    gx_ref[...] = (jnp.dot(x_ref[...], wih_ref[...],
                           preferred_element_type=jnp.float32) + b_ref[...])

    whh = whh_ref[...]   # (HP, 4*GW), loaded once, loop-invariant
    # TODO(synk): if the bundle dump shows the 128x512 RHS being re-latched every step,
    # drive the MXU explicitly (pltpu.matmul_push_rhs once, matmul_acc_lhs/pop per step).

    # 2) Time recurrence: h/c live in vregs as fori_loop carries (fully unrolled at T=8;
    #    switch to partial unroll + pl.multiple_of on `row` for large T).
    def step(t, carry):
        h, c = carry
        row = t * BP
        gates = gx_ref[pl.ds(row, BP), :] + jnp.dot(
            h, whh, preferred_element_type=jnp.float32)          # (BP, 4*GW)
        tg = jnp.tanh(gates)          # single 512-lane EUP launch; sigmoid strips pre-scaled
        i_g = 0.5 * (tg[:, 0 * GW:1 * GW] + 1.0)
        f_g = 0.5 * (tg[:, 1 * GW:2 * GW] + 1.0)
        o_g = 0.5 * (tg[:, 2 * GW:3 * GW] + 1.0)
        g_g = tg[:, 3 * GW:4 * GW]
        c_new = f_g * c + i_g * g_g
        h_new = o_g * jnp.tanh(c_new)
        hall_ref[pl.ds(row, BP), :] = h_new                      # full-lane aligned store
        return h_new, c_new

    h0 = jnp.zeros((BP, HP), jnp.float32)
    c0 = jnp.zeros((BP, HP), jnp.float32)
    lax.fori_loop(0, T, step, (h0, c0), unroll=True)

    # 3) Single output projection for all timesteps (lane-dense store).
    out_ref[...] = (jnp.dot(hall_ref[...], wlin_ref[...],
                            preferred_element_type=jnp.float32) + blin_ref[...])


@jax.jit
def joint_model_forward(x, packed):
    """x: (B, T, INPUT_SIZE) float32, packed = pack_params(...) -> (B, T, OUT) float32."""
    wih_p, whh_p, b_p, wlin_p, blin_p = packed
    B, T, I = x.shape
    assert I == INPUT_SIZE
    BP = max(8, ((B + 7) // 8) * 8)   # pad batch to a multiple of 8 sublanes
    f32 = jnp.float32

    # x prep stays inside this jit so XLA fuses it with the pallas_call.
    xp = jnp.zeros((T, BP, I), f32).at[:, :B, :].set(
        jnp.transpose(x.astype(f32), (1, 0, 2)))
    x_flat = xp.reshape(T * BP, I)

    kernel = functools.partial(_lstm_kernel, T=T, BP=BP)

    grid_spec = pltpu.PrefetchScalarGridSpec(
        num_scalar_prefetch=0,
        grid=(1,),                                   # single invocation; loop is in-kernel
        in_specs=[
            # For long T, add pipeline_mode=pl.Buffered(1) here (nothing to pipeline on a
            # 1-step grid) and chunk the time axis; unnecessary at T=8.
            pl.BlockSpec((T * BP, I), lambda i: (0, 0)),        # x (whole tensor in VMEM)
            pl.BlockSpec((I, 4 * GW), lambda i: (0, 0)),        # W_ih^T (gate-strip packed)
            pl.BlockSpec((HP, 4 * GW), lambda i: (0, 0)),       # W_hh^T (gate-strip packed)
            pl.BlockSpec((1, 4 * GW), lambda i: (0, 0)),        # combined bias
            pl.BlockSpec((HP, OUTP), lambda i: (0, 0)),         # W_lin^T (padded)
            pl.BlockSpec((1, OUTP), lambda i: (0, 0)),          # b_lin (padded)
        ],
        out_specs=pl.BlockSpec((T * BP, OUTP), lambda i: (0, 0)),
        scratch_shapes=[
            pltpu.VMEM((T * BP, 4 * GW), f32),   # gates_x for all timesteps
            pltpu.VMEM((T * BP, HP), f32),       # all h_t
        ],
    )

    out_flat = pl.pallas_call(
        kernel,
        out_shape=jax.ShapeDtypeStruct((T * BP, OUTP), f32),
        grid_spec=grid_spec,
        compiler_params=pltpu.CompilerParams(
            dimension_semantics=("arbitrary",),
            vmem_limit_bytes=32 * 1024 * 1024),
    )(x_flat, wih_p, whh_p, b_p, wlin_p, blin_p)

    # (T*BP, OUTP) -> (B, T, OUT): drop batch padding and output-lane padding.
    out = out_flat.reshape(T, BP, OUTP)[:, :B, :OUT]
    return jnp.transpose(out, (1, 0, 2))


def reference_forward(x, params):
    """Pure-JAX reference of PyTorch LSTM + Linear for verification."""
    w_ih, w_hh, b_ih, b_hh, w_lin, b_lin = params
    B, T, _ = x.shape
    H = HIDDEN

    def step(carry, x_t):
        h, c = carry
        gates = x_t @ w_ih.T + b_ih + h @ w_hh.T + b_hh
        i_g = jax.nn.sigmoid(gates[:, 0:H])
        f_g = jax.nn.sigmoid(gates[:, H:2 * H])
        g_g = jnp.tanh(gates[:, 2 * H:3 * H])
        o_g = jax.nn.sigmoid(gates[:, 3 * H:4 * H])
        c_new = f_g * c + i_g * g_g
        h_new = o_g * jnp.tanh(c_new)
        return (h_new, c_new), h_new

    h0 = jnp.zeros((B, H), jnp.float32)
    c0 = jnp.zeros((B, H), jnp.float32)
    _, hs = lax.scan(step, (h0, c0), jnp.transpose(x, (1, 0, 2)))
    hs = jnp.transpose(hs, (1, 0, 2))               # (B, T, H)
    return hs @ w_lin.T + b_lin


def init_params(key):
    ks = jax.random.split(key, 6)
    scale = 1.0 / np.sqrt(HIDDEN)
    w_ih = jax.random.uniform(ks[0], (4 * HIDDEN, INPUT_SIZE), jnp.float32, -scale, scale)
    w_hh = jax.random.uniform(ks[1], (4 * HIDDEN, HIDDEN), jnp.float32, -scale, scale)
    b_ih = jax.random.uniform(ks[2], (4 * HIDDEN,), jnp.float32, -scale, scale)
    b_hh = jax.random.uniform(ks[3], (4 * HIDDEN,), jnp.float32, -scale, scale)
    w_lin = jax.random.uniform(ks[4], (OUT, HIDDEN), jnp.float32, -scale, scale)
    b_lin = jax.random.uniform(ks[5], (OUT,), jnp.float32, -scale, scale)
    return (w_ih, w_hh, b_ih, b_hh, w_lin, b_lin)


if __name__ == "__main__":
    key = jax.random.PRNGKey(0)
    pkey, xkey = jax.random.split(key)

    params = init_params(pkey)
    packed = pack_params(params)      # one-time packing, cached outside the call path

    B, T = 2, 8
    x = jax.random.normal(xkey, (B, T, INPUT_SIZE), jnp.float32)

    out = joint_model_forward(x, packed)
    out = jax.block_until_ready(out)

    ref = jax.block_until_ready(reference_forward(x, params))
    np.testing.assert_allclose(np.asarray(out), np.asarray(ref), rtol=1e-5, atol=1e-5)

    assert out.shape == (B, T, OUT)
    print("KERNEL_OK")
</pallas_src>

<mosaic_0001>
module attributes {stable_mosaic.version = 11 : i64} {
  func.func @_lstm_kernel(%arg0: i32, %arg1: memref<64x11xf32, #tpu.memory_space<vmem>>, %arg2: memref<11x512xf32, #tpu.memory_space<vmem>>, %arg3: memref<128x512xf32, #tpu.memory_space<vmem>>, %arg4: memref<1x512xf32, #tpu.memory_space<vmem>>, %arg5: memref<128x128xf32, #tpu.memory_space<vmem>>, %arg6: memref<1x128xf32, #tpu.memory_space<vmem>>, %arg7: memref<64x128xf32, #tpu.memory_space<vmem>>, %arg8: memref<64x512xf32, #tpu.memory_space<vmem>>, %arg9: memref<64x128xf32, #tpu.memory_space<vmem>>) attributes {dimension_semantics = [#tpu.dimension_semantics<arbitrary>], iteration_bounds = array<i64: 1>, scalar_prefetch = 0 : i64, scratch_operands = 2 : i64, tpu.core_type = #tpu.core_type<tc>, window_params = [{pipeline_mode = #tpu.pipeline_mode<synchronous>, transform_indices = @transform_0, window_bounds = array<i64: 64, 11>}, {pipeline_mode = #tpu.pipeline_mode<synchronous>, transform_indices = @transform_1, window_bounds = array<i64: 11, 512>}, {pipeline_mode = #tpu.pipeline_mode<synchronous>, transform_indices = @transform_2, window_bounds = array<i64: 128, 512>}, {pipeline_mode = #tpu.pipeline_mode<synchronous>, transform_indices = @transform_3, window_bounds = array<i64: 1, 512>}, {pipeline_mode = #tpu.pipeline_mode<synchronous>, transform_indices = @transform_4, window_bounds = array<i64: 128, 128>}, {pipeline_mode = #tpu.pipeline_mode<synchronous>, transform_indices = @transform_5, window_bounds = array<i64: 1, 128>}, {pipeline_mode = #tpu.pipeline_mode<synchronous>, transform_indices = @transform_6, window_bounds = array<i64: 64, 128>}]} {
    %c0 = arith.constant 0 : index
    %c0_0 = arith.constant 0 : index
    %0 = vector.load %arg1[%c0, %c0_0] : memref<64x11xf32, #tpu.memory_space<vmem>>, vector<64x11xf32>
    %c0_1 = arith.constant 0 : index
    %c0_2 = arith.constant 0 : index
    %1 = vector.load %arg2[%c0_1, %c0_2] : memref<11x512xf32, #tpu.memory_space<vmem>>, vector<11x512xf32>
    %cst = arith.constant dense<0.000000e+00> : vector<64x512xf32>
    %2 = tpu.matmul %0, %1, %cst {dimension_numbers = #tpu.dot_dimension_numbers<[1], [0], [0], [1], [0, 0, 1, 1], [], []>} : vector<64x11xf32>, vector<11x512xf32>, vector<64x512xf32> -> vector<64x512xf32>
    %c0_3 = arith.constant 0 : index
    %c0_4 = arith.constant 0 : index
    %3 = vector.load %arg4[%c0_3, %c0_4] : memref<1x512xf32, #tpu.memory_space<vmem>>, vector<1x512xf32>
    %4 = vector.broadcast %3 : vector<1x512xf32> to vector<64x512xf32>
    %5 = arith.addf %2, %4 : vector<64x512xf32>
    %c0_5 = arith.constant 0 : index
    %c0_6 = arith.constant 0 : index
    %6 = vector.load %arg8[%c0_5, %c0_6] : memref<64x512xf32, #tpu.memory_space<vmem>>, vector<64x512xf32>
    tpu.vector_store %arg8[%c0_5, %c0_6], %5 {strides = array<i32>} : memref<64x512xf32, #tpu.memory_space<vmem>>, vector<64x512xf32>,
    %c0_7 = arith.constant 0 : index
    %c0_8 = arith.constant 0 : index
    %7 = vector.load %arg3[%c0_7, %c0_8] : memref<128x512xf32, #tpu.memory_space<vmem>>, vector<128x512xf32>
    %cst_9 = arith.constant 0.000000e+00 : f32
    %8 = vector.broadcast %cst_9 : f32 to vector<8x128xf32>
    %cst_10 = arith.constant 0.000000e+00 : f32
    %9 = vector.broadcast %cst_10 : f32 to vector<8x128xf32>
    %c0_i32 = arith.constant 0 : i32
    %c8_i32 = arith.constant 8 : i32
    %10 = arith.muli %c0_i32, %c8_i32 : i32
    %11 = arith.index_cast %10 : i32 to index
    %c0_11 = arith.constant 0 : index
    %12 = vector.load %arg8[%11, %c0_11] : memref<64x512xf32, #tpu.memory_space<vmem>>, vector<8x512xf32>
    %cst_12 = arith.constant dense<0.000000e+00> : vector<8x512xf32>
    %13 = tpu.matmul %8, %7, %cst_12 {dimension_numbers = #tpu.dot_dimension_numbers<[1], [0], [0], [1], [0, 0, 1, 1], [], []>} : vector<8x128xf32>, vector<128x512xf32>, vector<8x512xf32> -> vector<8x512xf32>
    %14 = arith.addf %12, %13 : vector<8x512xf32>
    %15 = math.tanh %14 : vector<8x512xf32>
    %16 = vector.extract_strided_slice %15 {offsets = [0, 0], sizes = [8, 128], strides = [1, 1]} : vector<8x512xf32> to vector<8x128xf32>
    %cst_13 = arith.constant 1.000000e+00 : f32
    %17 = vector.broadcast %cst_13 : f32 to vector<8x128xf32>
    %18 = arith.addf %16, %17 : vector<8x128xf32>
    %cst_14 = arith.constant 5.000000e-01 : f32
    %19 = vector.broadcast %cst_14 : f32 to vector<8x128xf32>
    %20 = arith.mulf %19, %18 : vector<8x128xf32>
    %21 = vector.extract_strided_slice %15 {offsets = [0, 128], sizes = [8, 128], strides = [1, 1]} : vector<8x512xf32> to vector<8x128xf32>
    %cst_15 = arith.constant 1.000000e+00 : f32
    %22 = vector.broadcast %cst_15 : f32 to vector<8x128xf32>
    %23 = arith.addf %21, %22 : vector<8x128xf32>
    %cst_16 = arith.constant 5.000000e-01 : f32
    %24 = vector.broadcast %cst_16 : f32 to vector<8x128xf32>
    %25 = arith.mulf %24, %23 : vector<8x128xf32>
    %26 = vector.extract_strided_slice %15 {offsets = [0, 256], sizes = [8, 128], strides = [1, 1]} : vector<8x512xf32> to vector<8x128xf32>
    %cst_17 = arith.constant 1.000000e+00 : f32
    %27 = vector.broadcast %cst_17 : f32 to vector<8x128xf32>
    %28 = arith.addf %26, %27 : vector<8x128xf32>
    %cst_18 = arith.constant 5.000000e-01 : f32
    %29 = vector.broadcast %cst_18 : f32 to vector<8x128xf32>
    %30 = arith.mulf %29, %28 : vector<8x128xf32>
    %31 = vector.extract_strided_slice %15 {offsets = [0, 384], sizes = [8, 128], strides = [1, 1]} : vector<8x512xf32> to vector<8x128xf32>
    %32 = arith.mulf %25, %9 : vector<8x128xf32>
    %33 = arith.mulf %20, %31 : vector<8x128xf32>
    %34 = arith.addf %32, %33 : vector<8x128xf32>
    %35 = math.tanh %34 : vector<8x128xf32>
    %36 = arith.mulf %30, %35 : vector<8x128xf32>
    %37 = arith.index_cast %10 : i32 to index
    %c0_19 = arith.constant 0 : index
    %38 = vector.load %arg9[%37, %c0_19] : memref<64x128xf32, #tpu.memory_space<vmem>>, vector<8x128xf32>
    tpu.vector_store %arg9[%37, %c0_19], %36 {strides = array<i32>} : memref<64x128xf32, #tpu.memory_space<vmem>>, vector<8x128xf32>,
    %c1_i32 = arith.constant 1 : i32
    %c8_i32_20 = arith.constant 8 : i32
    %39 = arith.muli %c1_i32, %c8_i32_20 : i32
    %40 = arith.index_cast %39 : i32 to index
    %c0_21 = arith.constant 0 : index
    %41 = vector.load %arg8[%40, %c0_21] : memref<64x512xf32, #tpu.memory_space<vmem>>, vector<8x512xf32>
    %cst_22 = arith.constant dense<0.000000e+00> : vector<8x512xf32>
    %42 = tpu.matmul %36, %7, %cst_22 {dimension_numbers = #tpu.dot_dimension_numbers<[1], [0], [0], [1], [0, 0, 1, 1], [], []>} : vector<8x128xf32>, vector<128x512xf32>, vector<8x512xf32> -> vector<8x512xf32>
    %43 = arith.addf %41, %42 : vector<8x512xf32>
    %44 = math.tanh %43 : vector<8x512xf32>
    %45 = vector.extract_strided_slice %44 {offsets = [0, 0], sizes = [8, 128], strides = [1, 1]} : vector<8x512xf32> to vector<8x128xf32>
    %cst_23 = arith.constant 1.000000e+00 : f32
    %46 = vector.broadcast %cst_23 : f32 to vector<8x128xf32>
    %47 = arith.addf %45, %46 : vector<8x128xf32>
    %cst_24 = arith.constant 5.000000e-01 : f32
    %48 = vector.broadcast %cst_24 : f32 to vector<8x128xf32>
    %49 = arith.mulf %48, %47 : vector<8x128xf32>
    %50 = vector.extract_strided_slice %44 {offsets = [0, 128], sizes = [8, 128], strides = [1, 1]} : vector<8x512xf32> to vector<8x128xf32>
    %cst_25 = arith.constant 1.000000e+00 : f32
    %51 = vector.broadcast %cst_25 : f32 to vector<8x128xf32>
    %52 = arith.addf %50, %51 : vector<8x128xf32>
    %cst_26 = arith.constant 5.000000e-01 : f32
    %53 = vector.broadcast %cst_26 : f32 to vector<8x128xf32>
    %54 = arith.mulf %53, %52 : vector<8x128xf32>
    %55 = vector.extract_strided_slice %44 {offsets = [0, 256], sizes = [8, 128], strides = [1, 1]} : vector<8x512xf32> to vector<8x128xf32>
    %cst_27 = arith.constant 1.000000e+00 : f32
    %56 = vector.broadcast %cst_27 : f32 to vector<8x128xf32>
    %57 = arith.addf %55, %56 : vector<8x128xf32>
    %cst_28 = arith.constant 5.000000e-01 : f32
    %58 = vector.broadcast %cst_28 : f32 to vector<8x128xf32>
    %59 = arith.mulf %58, %57 : vector<8x128xf32>
    %60 = vector.extract_strided_slice %44 {offsets = [0, 384], sizes = [8, 128], strides = [1, 1]} : vector<8x512xf32> to vector<8x128xf32>
    %61 = arith.mulf %54, %34 : vector<8x128xf32>
    %62 = arith.mulf %49, %60 : vector<8x128xf32>
    %63 = arith.addf %61, %62 : vector<8x128xf32>
    %64 = math.tanh %63 : vector<8x128xf32>
    %65 = arith.mulf %59, %64 : vector<8x128xf32>
    %66 = arith.index_cast %39 : i32 to index
    %c0_29 = arith.constant 0 : index
    %67 = vector.load %arg9[%66, %c0_29] : memref<64x128xf32, #tpu.memory_space<vmem>>, vector<8x128xf32>
    tpu.vector_store %arg9[%66, %c0_29], %65 {strides = array<i32>} : memref<64x128xf32, #tpu.memory_space<vmem>>, vector<8x128xf32>,
    %c2_i32 = arith.constant 2 : i32
    %c8_i32_30 = arith.constant 8 : i32
    %68 = arith.muli %c2_i32, %c8_i32_30 : i32
    %69 = arith.index_cast %68 : i32 to index
    %c0_31 = arith.constant 0 : index
    %70 = vector.load %arg8[%69, %c0_31] : memref<64x512xf32, #tpu.memory_space<vmem>>, vector<8x512xf32>
    %cst_32 = arith.constant dense<0.000000e+00> : vector<8x512xf32>
    %71 = tpu.matmul %65, %7, %cst_32 {dimension_numbers = #tpu.dot_dimension_numbers<[1], [0], [0], [1], [0, 0, 1, 1], [], []>} : vector<8x128xf32>, vector<128x512xf32>, vector<8x512xf32> -> vector<8x512xf32>
    %72 = arith.addf %70, %71 : vector<8x512xf32>
    %73 = math.tanh %72 : vector<8x512xf32>
    %74 = vector.extract_strided_slice %73 {offsets = [0, 0], sizes = [8, 128], strides = [1, 1]} : vector<8x512xf32> to vector<8x128xf32>
    %cst_33 = arith.constant 1.000000e+00 : f32
    %75 = vector.broadcast %cst_33 : f32 to vector<8x128xf32>
    %76 = arith.addf %74, %75 : vector<8x128xf32>
    %cst_34 = arith.constant 5.000000e-01 : f32
    %77 = vector.broadcast %cst_34 : f32 to vector<8x128xf32>
    %78 = arith.mulf %77, %76 : vector<8x128xf32>
    %79 = vector.extract_strided_slice %73 {offsets = [0, 128], sizes = [8, 128], strides = [1, 1]} : vector<8x512xf32> to vector<8x128xf32>
    %cst_35 = arith.constant 1.000000e+00 : f32
    %80 = vector.broadcast %cst_35 : f32 to vector<8x128xf32>
    %81 = arith.addf %79, %80 : vector<8x128xf32>
    %cst_36 = arith.constant 5.000000e-01 : f32
    %82 = vector.broadcast %cst_36 : f32 to vector<8x128xf32>
    %83 = arith.mulf %82, %81 : vector<8x128xf32>
    %84 = vector.extract_strided_slice %73 {offsets = [0, 256], sizes = [8, 128], strides = [1, 1]} : vector<8x512xf32> to vector<8x128xf32>
    %cst_37 = arith.constant 1.000000e+00 : f32
    %85 = vector.broadcast %cst_37 : f32 to vector<8x128xf32>
    %86 = arith.addf %84, %85 : vector<8x128xf32>
    %cst_38 = arith.constant 5.000000e-01 : f32
    %87 = vector.broadcast %cst_38 : f32 to vector<8x128xf32>
    %88 = arith.mulf %87, %86 : vector<8x128xf32>
    %89 = vector.extract_strided_slice %73 {offsets = [0, 384], sizes = [8, 128], strides = [1, 1]} : vector<8x512xf32> to vector<8x128xf32>
    %90 = arith.mulf %83, %63 : vector<8x128xf32>
    %91 = arith.mulf %78, %89 : vector<8x128xf32>
    %92 = arith.addf %90, %91 : vector<8x128xf32>
    %93 = math.tanh %92 : vector<8x128xf32>
    %94 = arith.mulf %88, %93 : vector<8x128xf32>
    %95 = arith.index_cast %68 : i32 to index
    %c0_39 = arith.constant 0 : index
    %96 = vector.load %arg9[%95, %c0_39] : memref<64x128xf32, #tpu.memory_space<vmem>>, vector<8x128xf32>
    tpu.vector_store %arg9[%95, %c0_39], %94 {strides = array<i32>} : memref<64x128xf32, #tpu.memory_space<vmem>>, vector<8x128xf32>,
    %c3_i32 = arith.constant 3 : i32
    %c8_i32_40 = arith.constant 8 : i32
    %97 = arith.muli %c3_i32, %c8_i32_40 : i32
    %98 = arith.index_cast %97 : i32 to index
    %c0_41 = arith.constant 0 : index
    %99 = vector.load %arg8[%98, %c0_41] : memref<64x512xf32, #tpu.memory_space<vmem>>, vector<8x512xf32>
    %cst_42 = arith.constant dense<0.000000e+00> : vector<8x512xf32>
    %100 = tpu.matmul %94, %7, %cst_42 {dimension_numbers = #tpu.dot_dimension_numbers<[1], [0], [0], [1], [0, 0, 1, 1], [], []>} : vector<8x128xf32>, vector<128x512xf32>, vector<8x512xf32> -> vector<8x512xf32>
    %101 = arith.addf %99, %100 : vector<8x512xf32>
    %102 = math.tanh %101 : vector<8x512xf32>
    %103 = vector.extract_strided_slice %102 {offsets = [0, 0], sizes = [8, 128], strides = [1, 1]} : vector<8x512xf32> to vector<8x128xf32>
    %cst_43 = arith.constant 1.000000e+00 : f32
    %104 = vector.broadcast %cst_43 : f32 to vector<8x128xf32>
    %105 = arith.addf %103, %104 : vector<8x128xf32>
    %cst_44 = arith.constant 5.000000e-01 : f32
    %106 = vector.broadcast %cst_44 : f32 to vector<8x128xf32>
    %107 = arith.mulf %106, %105 : vector<8x128xf32>
    %108 = vector.extract_strided_slice %102 {offsets = [0, 128], sizes = [8, 128], strides = [1, 1]} : vector<8x512xf32> to vector<8x128xf32>
    %cst_45 = arith.constant 1.000000e+00 : f32
    %109 = vector.broadcast %cst_45 : f32 to vector<8x128xf32>
    %110 = arith.addf %108, %109 : vector<8x128xf32>
    %cst_46 = arith.constant 5.000000e-01 : f32
    %111 = vector.broadcast %cst_46 : f32 to vector<8x128xf32>
    %112 = arith.mulf %111, %110 : vector<8x128xf32>
    %113 = vector.extract_strided_slice %102 {offsets = [0, 256], sizes = [8, 128], strides = [1, 1]} : vector<8x512xf32> to vector<8x128xf32>
    %cst_47 = arith.constant 1.000000e+00 : f32
    %114 = vector.broadcast %cst_47 : f32 to vector<8x128xf32>
    %115 = arith.addf %113, %114 : vector<8x128xf32>
    %cst_48 = arith.constant 5.000000e-01 : f32
    %116 = vector.broadcast %cst_48 : f32 to vector<8x128xf32>
    %117 = arith.mulf %116, %115 : vector<8x128xf32>
    %118 = vector.extract_strided_slice %102 {offsets = [0, 384], sizes = [8, 128], strides = [1, 1]} : vector<8x512xf32> to vector<8x128xf32>
    %119 = arith.mulf %112, %92 : vector<8x128xf32>
    %120 = arith.mulf %107, %118 : vector<8x128xf32>
    %121 = arith.addf %119, %120 : vector<8x128xf32>
    %122 = math.tanh %121 : vector<8x128xf32>
    %123 = arith.mulf %117, %122 : vector<8x128xf32>
    %124 = arith.index_cast %97 : i32 to index
    %c0_49 = arith.constant 0 : index
    %125 = vector.load %arg9[%124, %c0_49] : memref<64x128xf32, #tpu.memory_space<vmem>>, vector<8x128xf32>
    tpu.vector_store %arg9[%124, %c0_49], %123 {strides = array<i32>} : memref<64x128xf32, #tpu.memory_space<vmem>>, vector<8x128xf32>,
    %c4_i32 = arith.constant 4 : i32
    %c8_i32_50 = arith.constant 8 : i32
    %126 = arith.muli %c4_i32, %c8_i32_50 : i32
    %127 = arith.index_cast %126 : i32 to index
    %c0_51 = arith.constant 0 : index
    %128 = vector.load %arg8[%127, %c0_51] : memref<64x512xf32, #tpu.memory_space<vmem>>, vector<8x512xf32>
    %cst_52 = arith.constant dense<0.000000e+00> : vector<8x512xf32>
    %129 = tpu.matmul %123, %7, %cst_52 {dimension_numbers = #tpu.dot_dimension_numbers<[1], [0], [0], [1], [0, 0, 1, 1], [], []>} : vector<8x128xf32>, vector<128x512xf32>, vector<8x512xf32> -> vector<8x512xf32>
    %130 = arith.addf %128, %129 : vector<8x512xf32>
    %131 = math.tanh %130 : vector<8x512xf32>
    %132 = vector.extract_strided_slice %131 {offsets = [0, 0], sizes = [8, 128], strides = [1, 1]} : vector<8x512xf32> to vector<8x128xf32>
    %cst_53 = arith.constant 1.000000e+00 : f32
    %133 = vector.broadcast %cst_53 : f32 to vector<8x128xf32>
    %134 = arith.addf %132, %133 : vector<8x128xf32>
    %cst_54 = arith.constant 5.000000e-01 : f32
    %135 = vector.broadcast %cst_54 : f32 to vector<8x128xf32>
    %136 = arith.mulf %135, %134 : vector<8x128xf32>
    %137 = vector.extract_strided_slice %131 {offsets = [0, 128], sizes = [8, 128], strides = [1, 1]} : vector<8x512xf32> to vector<8x128xf32>
    %cst_55 = arith.constant 1.000000e+00 : f32
    %138 = vector.broadcast %cst_55 : f32 to vector<8x128xf32>
    %139 = arith.addf %137, %138 : vector<8x128xf32>
    %cst_56 = arith.constant 5.000000e-01 : f32
    %140 = vector.broadcast %cst_56 : f32 to vector<8x128xf32>
    %141 = arith.mulf %140, %139 : vector<8x128xf32>
    %142 = vector.extract_strided_slice %131 {offsets = [0, 256], sizes = [8, 128], strides = [1, 1]} : vector<8x512xf32> to vector<8x128xf32>
    %cst_57 = arith.constant 1.000000e+00 : f32
    %143 = vector.broadcast %cst_57 : f32 to vector<8x128xf32>
    %144 = arith.addf %142, %143 : vector<8x128xf32>
    %cst_58 = arith.constant 5.000000e-01 : f32
    %145 = vector.broadcast %cst_58 : f32 to vector<8x128xf32>
    %146 = arith.mulf %145, %144 : vector<8x128xf32>
    %147 = vector.extract_strided_slice %131 {offsets = [0, 384], sizes = [8, 128], strides = [1, 1]} : vector<8x512xf32> to vector<8x128xf32>
    %148 = arith.mulf %141, %121 : vector<8x128xf32>
    %149 = arith.mulf %136, %147 : vector<8x128xf32>
    %150 = arith.addf %148, %149 : vector<8x128xf32>
    %151 = math.tanh %150 : vector<8x128xf32>
    %152 = arith.mulf %146, %151 : vector<8x128xf32>
    %153 = arith.index_cast %126 : i32 to index
    %c0_59 = arith.constant 0 : index
    %154 = vector.load %arg9[%153, %c0_59] : memref<64x128xf32, #tpu.memory_space<vmem>>, vector<8x128xf32>
    tpu.vector_store %arg9[%153, %c0_59], %152 {strides = array<i32>} : memref<64x128xf32, #tpu.memory_space<vmem>>, vector<8x128xf32>,
    %c5_i32 = arith.constant 5 : i32
    %c8_i32_60 = arith.constant 8 : i32
    %155 = arith.muli %c5_i32, %c8_i32_60 : i32
    %156 = arith.index_cast %155 : i32 to index
    %c0_61 = arith.constant 0 : index
    %157 = vector.load %arg8[%156, %c0_61] : memref<64x512xf32, #tpu.memory_space<vmem>>, vector<8x512xf32>
    %cst_62 = arith.constant dense<0.000000e+00> : vector<8x512xf32>
    %158 = tpu.matmul %152, %7, %cst_62 {dimension_numbers = #tpu.dot_dimension_numbers<[1], [0], [0], [1], [0, 0, 1, 1], [], []>} : vector<8x128xf32>, vector<128x512xf32>, vector<8x512xf32> -> vector<8x512xf32>
    %159 = arith.addf %157, %158 : vector<8x512xf32>
    %160 = math.tanh %159 : vector<8x512xf32>
    %161 = vector.extract_strided_slice %160 {offsets = [0, 0], sizes = [8, 128], strides = [1, 1]} : vector<8x512xf32> to vector<8x128xf32>
    %cst_63 = arith.constant 1.000000e+00 : f32
    %162 = vector.broadcast %cst_63 : f32 to vector<8x128xf32>
    %163 = arith.addf %161, %162 : vector<8x128xf32>
    %cst_64 = arith.constant 5.000000e-01 : f32
    %164 = vector.broadcast %cst_64 : f32 to vector<8x128xf32>
    %165 = arith.mulf %164, %163 : vector<8x128xf32>
    %166 = vector.extract_strided_slice %160 {offsets = [0, 128], sizes = [8, 128], strides = [1, 1]} : vector<8x512xf32> to vector<8x128xf32>
    %cst_65 = arith.constant 1.000000e+00 : f32
    %167 = vector.broadcast %cst_65 : f32 to vector<8x128xf32>
    %168 = arith.addf %166, %167 : vector<8x128xf32>
    %cst_66 = arith.constant 5.000000e-01 : f32
    %169 = vector.broadcast %cst_66 : f32 to vector<8x128xf32>
    %170 = arith.mulf %169, %168 : vector<8x128xf32>
    %171 = vector.extract_strided_slice %160 {offsets = [0, 256], sizes = [8, 128], strides = [1, 1]} : vector<8x512xf32> to vector<8x128xf32>
    %cst_67 = arith.constant 1.000000e+00 : f32
    %172 = vector.broadcast %cst_67 : f32 to vector<8x128xf32>
    %173 = arith.addf %171, %172 : vector<8x128xf32>
    %cst_68 = arith.constant 5.000000e-01 : f32
    %174 = vector.broadcast %cst_68 : f32 to vector<8x128xf32>
    %175 = arith.mulf %174, %173 : vector<8x128xf32>
    %176 = vector.extract_strided_slice %160 {offsets = [0, 384], sizes = [8, 128], strides = [1, 1]} : vector<8x512xf32> to vector<8x128xf32>
    %177 = arith.mulf %170, %150 : vector<8x128xf32>
    %178 = arith.mulf %165, %176 : vector<8x128xf32>
    %179 = arith.addf %177, %178 : vector<8x128xf32>
    %180 = math.tanh %179 : vector<8x128xf32>
    %181 = arith.mulf %175, %180 : vector<8x128xf32>
    %182 = arith.index_cast %155 : i32 to index
    %c0_69 = arith.constant 0 : index
    %183 = vector.load %arg9[%182, %c0_69] : memref<64x128xf32, #tpu.memory_space<vmem>>, vector<8x128xf32>
    tpu.vector_store %arg9[%182, %c0_69], %181 {strides = array<i32>} : memref<64x128xf32, #tpu.memory_space<vmem>>, vector<8x128xf32>,
    %c6_i32 = arith.constant 6 : i32
    %c8_i32_70 = arith.constant 8 : i32
    %184 = arith.muli %c6_i32, %c8_i32_70 : i32
    %185 = arith.index_cast %184 : i32 to index
    %c0_71 = arith.constant 0 : index
    %186 = vector.load %arg8[%185, %c0_71] : memref<64x512xf32, #tpu.memory_space<vmem>>, vector<8x512xf32>
    %cst_72 = arith.constant dense<0.000000e+00> : vector<8x512xf32>
    %187 = tpu.matmul %181, %7, %cst_72 {dimension_numbers = #tpu.dot_dimension_numbers<[1], [0], [0], [1], [0, 0, 1, 1], [], []>} : vector<8x128xf32>, vector<128x512xf32>, vector<8x512xf32> -> vector<8x512xf32>
    %188 = arith.addf %186, %187 : vector<8x512xf32>
    %189 = math.tanh %188 : vector<8x512xf32>
    %190 = vector.extract_strided_slice %189 {offsets = [0, 0], sizes = [8, 128], strides = [1, 1]} : vector<8x512xf32> to vector<8x128xf32>
    %cst_73 = arith.constant 1.000000e+00 : f32
    %191 = vector.broadcast %cst_73 : f32 to vector<8x128xf32>
    %192 = arith.addf %190, %191 : vector<8x128xf32>
    %cst_74 = arith.constant 5.000000e-01 : f32
    %193 = vector.broadcast %cst_74 : f32 to vector<8x128xf32>
    %194 = arith.mulf %193, %192 : vector<8x128xf32>
    %195 = vector.extract_strided_slice %189 {offsets = [0, 128], sizes = [8, 128], strides = [1, 1]} : vector<8x512xf32> to vector<8x128xf32>
    %cst_75 = arith.constant 1.000000e+00 : f32
    %196 = vector.broadcast %cst_75 : f32 to vector<8x128xf32>
    %197 = arith.addf %195, %196 : vector<8x128xf32>
    %cst_76 = arith.constant 5.000000e-01 : f32
    %198 = vector.broadcast %cst_76 : f32 to vector<8x128xf32>
    %199 = arith.mulf %198, %197 : vector<8x128xf32>
    %200 = vector.extract_strided_slice %189 {offsets = [0, 256], sizes = [8, 128], strides = [1, 1]} : vector<8x512xf32> to vector<8x128xf32>
    %cst_77 = arith.constant 1.000000e+00 : f32
    %201 = vector.broadcast %cst_77 : f32 to vector<8x128xf32>
    %202 = arith.addf %200, %201 : vector<8x128xf32>
    %cst_78 = arith.constant 5.000000e-01 : f32
    %203 = vector.broadcast %cst_78 : f32 to vector<8x128xf32>
    %204 = arith.mulf %203, %202 : vector<8x128xf32>
    %205 = vector.extract_strided_slice %189 {offsets = [0, 384], sizes = [8, 128], strides = [1, 1]} : vector<8x512xf32> to vector<8x128xf32>
    %206 = arith.mulf %199, %179 : vector<8x128xf32>
    %207 = arith.mulf %194, %205 : vector<8x128xf32>
    %208 = arith.addf %206, %207 : vector<8x128xf32>
    %209 = math.tanh %208 : vector<8x128xf32>
    %210 = arith.mulf %204, %209 : vector<8x128xf32>
    %211 = arith.index_cast %184 : i32 to index
    %c0_79 = arith.constant 0 : index
    %212 = vector.load %arg9[%211, %c0_79] : memref<64x128xf32, #tpu.memory_space<vmem>>, vector<8x128xf32>
    tpu.vector_store %arg9[%211, %c0_79], %210 {strides = array<i32>} : memref<64x128xf32, #tpu.memory_space<vmem>>, vector<8x128xf32>,
    %c7_i32 = arith.constant 7 : i32
    %c8_i32_80 = arith.constant 8 : i32
    %213 = arith.muli %c7_i32, %c8_i32_80 : i32
    %214 = arith.index_cast %213 : i32 to index
    %c0_81 = arith.constant 0 : index
    %215 = vector.load %arg8[%214, %c0_81] : memref<64x512xf32, #tpu.memory_space<vmem>>, vector<8x512xf32>
    %cst_82 = arith.constant dense<0.000000e+00> : vector<8x512xf32>
    %216 = tpu.matmul %210, %7, %cst_82 {dimension_numbers = #tpu.dot_dimension_numbers<[1], [0], [0], [1], [0, 0, 1, 1], [], []>} : vector<8x128xf32>, vector<128x512xf32>, vector<8x512xf32> -> vector<8x512xf32>
    %217 = arith.addf %215, %216 : vector<8x512xf32>
    %218 = math.tanh %217 : vector<8x512xf32>
    %219 = vector.extract_strided_slice %218 {offsets = [0, 0], sizes = [8, 128], strides = [1, 1]} : vector<8x512xf32> to vector<8x128xf32>
    %cst_83 = arith.constant 1.000000e+00 : f32
    %220 = vector.broadcast %cst_83 : f32 to vector<8x128xf32>
    %221 = arith.addf %219, %220 : vector<8x128xf32>
    %cst_84 = arith.constant 5.000000e-01 : f32
    %222 = vector.broadcast %cst_84 : f32 to vector<8x128xf32>
    %223 = arith.mulf %222, %221 : vector<8x128xf32>
    %224 = vector.extract_strided_slice %218 {offsets = [0, 128], sizes = [8, 128], strides = [1, 1]} : vector<8x512xf32> to vector<8x128xf32>
    %cst_85 = arith.constant 1.000000e+00 : f32
    %225 = vector.broadcast %cst_85 : f32 to vector<8x128xf32>
    %226 = arith.addf %224, %225 : vector<8x128xf32>
    %cst_86 = arith.constant 5.000000e-01 : f32
    %227 = vector.broadcast %cst_86 : f32 to vector<8x128xf32>
    %228 = arith.mulf %227, %226 : vector<8x128xf32>
    %229 = vector.extract_strided_slice %218 {offsets = [0, 256], sizes = [8, 128], strides = [1, 1]} : vector<8x512xf32> to vector<8x128xf32>
    %cst_87 = arith.constant 1.000000e+00 : f32
    %230 = vector.broadcast %cst_87 : f32 to vector<8x128xf32>
    %231 = arith.addf %229, %230 : vector<8x128xf32>
    %cst_88 = arith.constant 5.000000e-01 : f32
    %232 = vector.broadcast %cst_88 : f32 to vector<8x128xf32>
    %233 = arith.mulf %232, %231 : vector<8x128xf32>
    %234 = vector.extract_strided_slice %218 {offsets = [0, 384], sizes = [8, 128], strides = [1, 1]} : vector<8x512xf32> to vector<8x128xf32>
    %235 = arith.mulf %228, %208 : vector<8x128xf32>
    %236 = arith.mulf %223, %234 : vector<8x128xf32>
    %237 = arith.addf %235, %236 : vector<8x128xf32>
    %238 = math.tanh %237 : vector<8x128xf32>
    %239 = arith.mulf %233, %238 : vector<8x128xf32>
    %240 = arith.index_cast %213 : i32 to index
    %c0_89 = arith.constant 0 : index
    %241 = vector.load %arg9[%240, %c0_89] : memref<64x128xf32, #tpu.memory_space<vmem>>, vector<8x128xf32>
    tpu.vector_store %arg9[%240, %c0_89], %239 {strides = array<i32>} : memref<64x128xf32, #tpu.memory_space<vmem>>, vector<8x128xf32>,
    %c8_i32_90 = arith.constant 8 : i32
    %c0_91 = arith.constant 0 : index
    %c0_92 = arith.constant 0 : index
    %242 = vector.load %arg9[%c0_91, %c0_92] : memref<64x128xf32, #tpu.memory_space<vmem>>, vector<64x128xf32>
    %c0_93 = arith.constant 0 : index
    %c0_94 = arith.constant 0 : index
    %243 = vector.load %arg5[%c0_93, %c0_94] : memref<128x128xf32, #tpu.memory_space<vmem>>, vector<128x128xf32>
    %cst_95 = arith.constant dense<0.000000e+00> : vector<64x128xf32>
    %244 = tpu.matmul %242, %243, %cst_95 {dimension_numbers = #tpu.dot_dimension_numbers<[1], [0], [0], [1], [0, 0, 1, 1], [], []>} : vector<64x128xf32>, vector<128x128xf32>, vector<64x128xf32> -> vector<64x128xf32>
    %c0_96 = arith.constant 0 : index
    %c0_97 = arith.constant 0 : index
    %245 = vector.load %arg6[%c0_96, %c0_97] : memref<1x128xf32, #tpu.memory_space<vmem>>, vector<1x128xf32>
    %246 = vector.broadcast %245 : vector<1x128xf32> to vector<64x128xf32>
    %247 = arith.addf %244, %246 : vector<64x128xf32>
    %c0_98 = arith.constant 0 : index
    %c0_99 = arith.constant 0 : index
    %248 = vector.load %arg7[%c0_98, %c0_99] : memref<64x128xf32, #tpu.memory_space<vmem>>, vector<64x128xf32>
    tpu.vector_store %arg7[%c0_98, %c0_99], %247 {strides = array<i32>} : memref<64x128xf32, #tpu.memory_space<vmem>>, vector<64x128xf32>,
    return
  }
  func.func @transform_0(%arg0: i32) -> (i32, i32) {
    %c0_i32 = arith.constant 0 : i32
    %c0_i32_0 = arith.constant 0 : i32
    %c0_i32_1 = arith.constant 0 : i32
    return %c0_i32, %c0_i32_0 : i32, i32
  }
  func.func @transform_1(%arg0: i32) -> (i32, i32) {
    %c0_i32 = arith.constant 0 : i32
    %c0_i32_0 = arith.constant 0 : i32
    %c0_i32_1 = arith.constant 0 : i32
    return %c0_i32, %c0_i32_0 : i32, i32
  }
  func.func @transform_2(%arg0: i32) -> (i32, i32) {
    %c0_i32 = arith.constant 0 : i32
    %c0_i32_0 = arith.constant 0 : i32
    %c0_i32_1 = arith.constant 0 : i32
    return %c0_i32, %c0_i32_0 : i32, i32
  }
  func.func @transform_3(%arg0: i32) -> (i32, i32) {
    %c0_i32 = arith.constant 0 : i32
    %c0_i32_0 = arith.constant 0 : i32
    %c0_i32_1 = arith.constant 0 : i32
    return %c0_i32, %c0_i32_0 : i32, i32
  }
  func.func @transform_4(%arg0: i32) -> (i32, i32) {
    %c0_i32 = arith.constant 0 : i32
    %c0_i32_0 = arith.constant 0 : i32
    %c0_i32_1 = arith.constant 0 : i32
    return %c0_i32, %c0_i32_0 : i32, i32
  }
  func.func @transform_5(%arg0: i32) -> (i32, i32) {
    %c0_i32 = arith.constant 0 : i32
    %c0_i32_0 = arith.constant 0 : i32
    %c0_i32_1 = arith.constant 0 : i32
    return %c0_i32, %c0_i32_0 : i32, i32
  }
  func.func @transform_6(%arg0: i32) -> (i32, i32) {
    %c0_i32 = arith.constant 0 : i32
    %c0_i32_0 = arith.constant 0 : i32
    %c0_i32_1 = arith.constant 0 : i32
    return %c0_i32, %c0_i32_0 : i32, i32
  }
}

</mosaic_0001>

<bundles_post_ra>
// kernel: joint_model_forward.1
= control target key start
LH: loop header
LB: loop body
LE: loop exit
PB: predicated region body
PF: predicated region fallthrough
CT: control target
= control target key end

     0   :  { %11 = vsyncpa [#allocation5], 0  ;;  %s3488_s0 = inlined_call_operand.vmem [shape: f32[64,11], index: 0, kind: input, shape index: {}]   ;;  %s3489_s1 = inlined_call_operand.hbm [shape: f32[11,512], index: 1, kind: input, shape index: {}]   ;;  %s3490_s2 = inlined_call_operand.hbm [shape: f32[128,512], index: 2, kind: input, shape index: {}]   ;;  %s3491_s3 = inlined_call_operand.hbm [shape: f32[1,512], index: 3, kind: input, shape index: {}]   ;;  %s3492_s4 = inlined_call_operand.vmem [shape: f32[128,128], index: 4, kind: input, shape index: {}]   ;;  %s3493_s5 = inlined_call_operand.vmem [shape: f32[1,128], index: 5, kind: input, shape index: {}]   ;;  %s3494_s6 = inlined_call_operand.vmem [shape: f32[64,128], index: 6, kind: output, shape index: {}]  }
   0x1   :  { %12 = vsyncpa [#allocation7], 0  ;;  %s2804_s21 = smov [#allocation6]   ;;  %s2805_s23 = smov [#allocation4]  }
   0x2   :  { %s32_s22 = sshll.u32 %s2804_s21, 4  ;;  %s20_s24 = sshll.u32 %s2805_s23, 4  ;;  %s33_s22 = int_to_ptr.vmem [resolvable:$true] %s32_s22  ;;  %s2846_s24 = int_to_ptr.vmem [resolvable:$true] %s20_s24 }
   0x3   :  { %s2734_s27 = scalar_lea.hbm %s3490_s2, 8192 }
   0x4   :  { %p2735_p0 = scmp.ne.s32.totalorder %s3490_s2, %s2734_s27  ;;  %p2738_p1 = scmp.lt.u32.totalorder %s2734_s27, %s3490_s2 }
   0x6   :  { %p2740_p2 = pnand %p2738_p1, %p2735_p0 }
   0x8   :  { %2743 = shalt.err (!%p2740_p2)
}
   0x9   :  { %s2744_s8 = scalar_lea.vmem %s33_s22, 8192  ;;  %p2749_p4 = scmp.lt.s32.totalorder %s33_s22, %s33_s22 }
   0xa   :  { %p2745_p3 = scmp.ne.s32.totalorder %s33_s22, %s2744_s8  ;;  %p2750_p5 = scmp.lt.s32.totalorder %s2744_s8, %s2744_s8 }
   0xc   :  { %p2751_p6 = por %p2750_p5, %p2749_p4 }
   0xe   :  { %p2752_p7 = pnand %p2751_p6, %p2745_p3 }
  0x10   :  { %2755 = shalt.err (!%p2752_p7)
}
  0x11   :  { %s2806_s9 = smov 512   ;;  %s2807_s10 = smov 32  }
  0x12   :  { %38 = dma.hbm_to_vmem [thread:$0]  %s3490_s2, 8192, %s33_s22, [#allocation7], %s2806_s9, %s2806_s9, %s2807_s10  }
  0x13   :  { %s2756_s15 = scalar_lea.hbm %s3489_s1, 1024 }
  0x14   :  { %p2757_p8 = scmp.ne.s32.totalorder %s3489_s1, %s2756_s15  ;;  %p2760_p9 = scmp.lt.u32.totalorder %s2756_s15, %s3489_s1 }
  0x16   :  { %p2762_p10 = pnand %p2760_p9, %p2757_p8 }
  0x18   :  { %2765 = shalt.err (!%p2762_p10)
}
  0x19   :  { %s2766_s20 = scalar_lea.vmem %s2846_s24, 1024  ;;  %p2771_p12 = scmp.lt.s32.totalorder %s2846_s24, %s2846_s24 }
  0x1a   :  { %p2767_p11 = scmp.ne.s32.totalorder %s2846_s24, %s2766_s20  ;;  %p2772_p13 = scmp.lt.s32.totalorder %s2766_s20, %s2766_s20 }
  0x1c   :  { %p2773_p0 = por %p2772_p13, %p2771_p12 }
  0x1e   :  { %p2774_p1 = pnand %p2773_p0, %p2767_p11 }
  0x20   :  { %2777 = shalt.err (!%p2774_p1)
}
  0x21   :  { %26 = dma.hbm_to_vmem [thread:$0]  %s3489_s1, 1024, %s2846_s24, [#allocation5], %s2806_s9, %s2806_s9, %s2807_s10  }
  0x22   :  { %s2808_s22 = smov [#allocation8]   ;;  %s2778_s27 = scalar_lea.hbm %s3491_s3, 64 }
  0x23   :  { %s45_s23 = sshll.u32 %s2808_s22, 4  ;;  %p2779_p2 = scmp.ne.s32.totalorder %s3491_s3, %s2778_s27  ;;  %s46_s23 = int_to_ptr.vmem [resolvable:$true] %s45_s23 }
  0x24   :  { %p2782_p3 = scmp.lt.u32.totalorder %s2778_s27, %s3491_s3 }
  0x26   :  { %p2784_p4 = pnand %p2782_p3, %p2779_p2 }
  0x28   :  { %2787 = shalt.err (!%p2784_p4)
}
  0x29   :  { %s2788_s8 = scalar_lea.vmem %s46_s23, 64  ;;  %p2793_p6 = scmp.lt.s32.totalorder %s46_s23, %s46_s23 }
  0x2a   :  { %p2789_p5 = scmp.ne.s32.totalorder %s46_s23, %s2788_s8  ;;  %p2794_p7 = scmp.lt.s32.totalorder %s2788_s8, %s2788_s8 }
  0x2c   :  { %p2795_p8 = por %p2794_p7, %p2793_p6 }
  0x2e   :  { %p2796_p9 = pnand %p2795_p8, %p2789_p5 }
  0x30   :  { %2799 = shalt.err (!%p2796_p9)
}
  0x31   :  { %48 = dma.hbm_to_vmem [thread:$0]  %s3491_s3, 64, %s46_s23, [#allocation7]  }
  0x32   :  { %2800 = dma.done.wait [#allocation5], 1024  }
  0x33   :  { %2801 = vsyncadd [#allocation5], 4294966272 }
  0x34   :  { %2802 = dma.done.wait [#allocation7], 8256  }
  0x35   :  { %2803 = vsyncadd [#allocation7], 4294959040  ;;  %v2809_v0 = vmov 0.0   ;;  %vm125_vm0 = vcmask 1042432   ;;  %vm2810_vm1 = vmmov 1   ;;  %v73_v2 = vld [vmem:[#allocation4 + $0x18] sm:$0xff] }
  0x36   :  { %315 = vmatprep.mubr.f32.mxu1 %v2809_v0  ;;  %202 = vmatprep.mubr.f32.mxu0 %v2809_v0  ;;  %vm2891_vm2 = vmpackc.low %vm125_vm0, %vm2810_vm1  ;;  %v77_v3 = vld [vmem:[#allocation4 + $0x38] sm:$0x7]  ;;  %v72_v4 = vld [vmem:[#allocation4 + $0x10] sm:$0xff]  ;;  %vm100_vm3 = vcmask 89088  }
  0x37   :  { %v2033_v5 = vpack.c.bf16 %v77_v3, %v73_v2  ;;  %v76_v6 = vld [vmem:[#allocation4 + $0x30] sm:$0x7]  ;;  %v397_v7 = vld [vmem:[#allocation6 + $0x8] sm:$0xff]  ;;  %v396_v10 = vld [vmem:[#allocation6] sm:$0xff] }
  0x38   :  { %v2036_v8 = vpack.c.bf16 %v76_v6, %v72_v4  ;;  %v401_v9 = vld [vmem:[#allocation6 + $0x28] sm:$0xff]  ;;  %v400_v11 = vld [vmem:[#allocation6 + $0x20] sm:$0xff]  ;;  %v2929_v29 = vld [vmem:[%s3488_s0 + $0x10] sm:$0xff] }
  0x39   :  { %2035 = vmatprep.subr.msk.bf16.mxu1 %vm2891_vm2, %v2033_v5  ;;  %v2897_v12 = vpack.c.bf16 %v401_v9, %v397_v7  ;;  %v405_v13 = vld [vmem:[#allocation6 + $0x48] sm:$0xff]  ;;  %v62_v15 = vld [vmem:[%s3488_s0] sm:$0xff]  ;;  %v2904_v16 = vpack.c.bf16 %v400_v11, %v396_v10  ;;  %v2943_v42 = vld [vmem:[%s3488_s0 + $0x18] sm:$0xff] }
  0x3a   :  { %v409_v14 = vld [vmem:[#allocation6 + $0x68] sm:$0xff]  ;;  %2038 = vmatpush1.bf16.msk.msra.mxu1 %vm2891_vm2, %v2036_v8  ;;  %v404_v18 = vld [vmem:[#allocation6 + $0x40] sm:$0xff]  ;;  %v68_v63 = vld [vmem:[%s3488_s0 + $0x30] sm:$0xff] }
  0x3b   :  { %2040 = vmatprep.subr.bf16.mxu1 %v2897_v12  ;;  %v2907_v17 = vpack.c.bf16 %v409_v14, %v405_v13  ;;  %v408_v19 = vld [vmem:[#allocation6 + $0x60] sm:$0xff]  ;;  %v413_v20 = vld [vmem:[#allocation6 + $0x88] sm:$0xff]  ;;  %v399_v5 = vld [vmem:[#allocation6 + $0x18] sm:$0xff] }
  0x3c   :  { %v417_v21 = vld [vmem:[#allocation6 + $0xa8] sm:$0xff]  ;;  %v2917_v23 = vpack.c.bf16 %v408_v19, %v404_v18  ;;  %v412_v25 = vld [vmem:[#allocation6 + $0x80] sm:$0xff]  ;;  %v403_v6 = vld [vmem:[#allocation6 + $0x38] sm:$0xff] }
  0x3d   :  { %1950 = vmatmul.mubr.msk.f32.vlgmr.msra.gmra.mrb[0].mxu1 %vm100_vm3, %v62_v15  ;;  %v2915_v22 = vld [vmem:[%s3488_s0 + $0x8] sm:$0xff]  ;;  %v2920_v24 = vpack.c.bf16 %v417_v21, %v413_v20  ;;  %v416_v26 = vld [vmem:[#allocation6 + $0xa0] sm:$0xff]  ;;  %v69_v7 = vld [vmem:[%s3488_s0 + $0x38] sm:$0xff]  ;;  %v3018_v9 = vpack.c.bf16 %v403_v6, %v399_v5 }
  0x3e   :  { %2042 = vmatpush1.bf16.msra.mxu1 %v2904_v16  ;;  %321 = vmatprep.mubr.f32.mxu1 %v2809_v0  ;;  %v421_v27 = vld [vmem:[#allocation6 + $0xc8] sm:$0xff]  ;;  %v2931_v30 = vpack.c.bf16 %v416_v26, %v412_v25  ;;  %v420_v31 = vld [vmem:[#allocation6 + $0xc0] sm:$0xff]  ;;  %v398_v10 = vld [vmem:[#allocation6 + $0x10] sm:$0xff] }
  0x3f   :  { %2044 = vmatprep.subr.bf16.mxu1 %v2907_v17  ;;  %v425_v28 = vld [vmem:[#allocation6 + $0xe8] sm:$0xff]  ;;  %v424_v32 = vld [vmem:[#allocation6 + $0xe0] sm:$0xff]  ;;  %v402_v11 = vld [vmem:[#allocation6 + $0x30] sm:$0xff] }
  0x40   :  { %v2934_v33 = vpack.c.bf16 %v425_v28, %v421_v27  ;;  %v71_v34 = vld [vmem:[#allocation4 + $0x8] sm:$0xff]  ;;  %v70_v36 = vld [vmem:[#allocation4] sm:$0xff]  ;;  %v2945_v43 = vpack.c.bf16 %v424_v32, %v420_v31  ;;  %v407_v13 = vld [vmem:[#allocation6 + $0x58] sm:$0xff] }
  0x41   :  { %1951 = vmatmul.mubr.msk.f32.gmra.mrb[2].mxu1 %vm100_vm3, %v2915_v22  ;;  %v75_v35 = vld [vmem:[#allocation4 + $0x28] sm:$0x7]  ;;  %v74_v40 = vld [vmem:[#allocation4 + $0x20] sm:$0x7]  ;;  %v411_v14 = vld [vmem:[#allocation6 + $0x78] sm:$0xff] }
  0x42   :  { %2046 = vmatpush1.bf16.msra.mxu1 %v2917_v23  ;;  %327 = vmatprep.mubr.f32.mxu1 %v2809_v0  ;;  %v429_v37 = vld [vmem:[#allocation6 + $0x108] sm:$0xff]  ;;  %v2027_v39 = vpack.c.bf16 %v75_v35, %v71_v34  ;;  %v2030_v41 = vpack.c.bf16 %v74_v40, %v70_v36  ;;  %v428_v45 = vld [vmem:[#allocation6 + $0x100] sm:$0xff]  ;;  %v3031_v18 = vpack.c.bf16 %v411_v14, %v407_v13  ;;  %v406_v19 = vld [vmem:[#allocation6 + $0x50] sm:$0xff] }
  0x43   :  { %2048 = vmatprep.subr.bf16.mxu1 %v2920_v24  ;;  %v433_v38 = vld [vmem:[#allocation6 + $0x128] sm:$0xff]  ;;  %v432_v46 = vld [vmem:[#allocation6 + $0x120] sm:$0xff]  ;;  %v410_v20 = vld [vmem:[#allocation6 + $0x70] sm:$0xff] }
  0x44   :  { %v2948_v44 = vpack.c.bf16 %v433_v38, %v429_v37  ;;  %2029 = vmatprep.subr.msk.bf16.mxu0 %vm2891_vm2, %v2027_v39  ;;  %v437_v47 = vld [vmem:[#allocation6 + $0x148] sm:$0xff]  ;;  %v2962_v49 = vld [vmem:[%s3488_s0 + $0x20] sm:$0xff]  ;;  %v2964_v50 = vpack.c.bf16 %v432_v46, %v428_v45  ;;  %v415_v21 = vld [vmem:[#allocation6 + $0x98] sm:$0xff]  ;;  %v3040_v25 = vpack.c.bf16 %v410_v20, %v406_v19 }
  0x45   :  { %1952 = vmatmul.mubr.msk.f32.gmra.mrb[4].mxu1 %vm100_vm3, %v2929_v29  ;;  %v441_v48 = vld [vmem:[#allocation6 + $0x168] sm:$0xff]  ;;  %2032 = vmatpush1.bf16.msk.msra.mxu0 %vm2891_vm2, %v2030_v41  ;;  %v436_v52 = vld [vmem:[#allocation6 + $0x140] sm:$0xff]  ;;  %v414_v27 = vld [vmem:[#allocation6 + $0x90] sm:$0xff] }
  0x46   :  { %2050 = vmatpush1.bf16.msra.mxu1 %v2931_v30  ;;  %333 = vmatprep.mubr.f32.mxu1 %v2809_v0  ;;  %v2967_v51 = vpack.c.bf16 %v441_v48, %v437_v47  ;;  %v440_v53 = vld [vmem:[#allocation6 + $0x160] sm:$0xff]  ;;  %v445_v54 = vld [vmem:[#allocation6 + $0x188] sm:$0xff]  ;;  %v418_v28 = vld [vmem:[#allocation6 + $0xb0] sm:$0xff] }
  0x47   :  { %2052 = vmatprep.subr.bf16.mxu1 %v2934_v33  ;;  %2104 = vmatprep.subr.bf16.mxu0 %v2897_v12  ;;  %v449_v55 = vld [vmem:[#allocation6 + $0x1a8] sm:$0xff]  ;;  %v2982_v57 = vpack.c.bf16 %v440_v53, %v436_v52  ;;  %v444_v59 = vld [vmem:[#allocation6 + $0x180] sm:$0xff]  ;;  %v427_v31 = vld [vmem:[#allocation6 + $0xf8] sm:$0xff]  ;;  %v3052_v32 = vpack.c.bf16 %v418_v28, %v414_v27 }
  0x48   :  { %1940 = vmatmul.mubr.msk.f32.vlgmr.msra.gmra.mrb[0].mxu0 %vm100_vm3, %v62_v15  ;;  %v2980_v56 = vld [vmem:[%s3488_s0 + $0x28] sm:$0xff]  ;;  %v2985_v58 = vpack.c.bf16 %v449_v55, %v445_v54  ;;  %v448_v60 = vld [vmem:[#allocation6 + $0x1a0] sm:$0xff]  ;;  %v3028_v15 = vpack.c.bf16 %v402_v11, %v398_v10  ;;  %v422_v35 = vld [vmem:[#allocation6 + $0xd0] sm:$0xff] }
  0x49   :  { %1953 = vmatmul.mubr.msk.f32.gmra.mrb[6].mxu1 %vm100_vm3, %v2943_v42  ;;  %2106 = vmatpush1.bf16.msra.mxu0 %v2904_v16  ;;  %v453_v61 = vld [vmem:[#allocation6 + $0x1c8] sm:$0xff]  ;;  %v2999_v1 = vpack.c.bf16 %v448_v60, %v444_v59  ;;  %v452_v3 = vld [vmem:[#allocation6 + $0x1c0] sm:$0xff]  ;;  %v426_v36 = vld [vmem:[#allocation6 + $0xf0] sm:$0xff] }
  0x4a   :  { %2054 = vmatpush1.bf16.msra.mxu1 %v2945_v43  ;;  %339 = vmatprep.mubr.f32.mxu1 %v2809_v0  ;;  %v457_v62 = vld [vmem:[#allocation6 + $0x1e8] sm:$0xff]  ;;  %v456_v4 = vld [vmem:[#allocation6 + $0x1e0] sm:$0xff]  ;;  %v431_v37 = vld [vmem:[#allocation6 + $0x118] sm:$0xff]  ;;  %v3062_v39 = vpack.c.bf16 %v426_v36, %v422_v35 }
  0x4b   :  { %2056 = vmatprep.subr.bf16.mxu1 %v2948_v44  ;;  %208 = vmatprep.mubr.f32.mxu0 %v2809_v0  ;;  %v3002_v2 = vpack.c.bf16 %v457_v62, %v453_v61  ;;  %v3015_v8 = vpack.c.bf16 %v456_v4, %v452_v3  ;;  %v435_v38 = vld [vmem:[#allocation6 + $0x138] sm:$0xff]  ;;  %v430_v41 = vld [vmem:[#allocation6 + $0x110] sm:$0xff]  ;;  %v78_v19 = vld [vmem:[#allocation8] sm:$0xf] }
  0x4c   :  { %2108 = vmatprep.subr.bf16.mxu0 %v2907_v17  ;;  %1941 = vmatmul.mubr.msk.f32.gmra.mrb[2].mxu0 %vm100_vm3, %v2915_v22  ;;  %v419_v22 = vld [vmem:[#allocation6 + $0xb8] sm:$0xff]  ;;  %v3065_v40 = vpack.c.bf16 %v435_v38, %v431_v37  ;;  %v442_v52 = vld [vmem:[#allocation6 + $0x170] sm:$0xff] }
  0x4d   :  { %1954 = vmatmul.mubr.msk.f32.gmra.mrb[8].mxu1 %vm100_vm3, %v2962_v49  ;;  %2110 = vmatpush1.bf16.msra.mxu0 %v2917_v23  ;;  %v3044_v26 = vpack.c.bf16 %v419_v22, %v415_v21  ;;  %v439_v45 = vld [vmem:[#allocation6 + $0x158] sm:$0xff]  ;;  %v446_v59 = vld [vmem:[#allocation6 + $0x190] sm:$0xff] }
  0x4e   :  { %2058 = vmatpush1.bf16.msra.mxu1 %v2964_v50  ;;  %345 = vmatprep.mubr.f32.mxu1 %v2809_v0  ;;  %v443_v46 = vld [vmem:[#allocation6 + $0x178] sm:$0xff]  ;;  %v450_v60 = vld [vmem:[#allocation6 + $0x1b0] sm:$0xff] }
  0x4f   :  { %2060 = vmatprep.subr.bf16.mxu1 %v2967_v51  ;;  %214 = vmatprep.mubr.f32.mxu0 %v2809_v0  ;;  %v3075_v48 = vpack.c.bf16 %v443_v46, %v439_v45  ;;  %v447_v53 = vld [vmem:[#allocation6 + $0x198] sm:$0xff]  ;;  %v454_v4 = vld [vmem:[#allocation6 + $0x1d0] sm:$0xff] }
  0x50   :  { %2112 = vmatprep.subr.bf16.mxu0 %v2920_v24  ;;  %1942 = vmatmul.mubr.msk.f32.gmra.mrb[4].mxu0 %vm100_vm3, %v2929_v29  ;;  %v423_v29 = vld [vmem:[#allocation6 + $0xd8] sm:$0xff]  ;;  %v458_v5 = vld [vmem:[#allocation6 + $0x1f0] sm:$0xff] }
  0x51   :  { %1955 = vmatmul.mubr.msk.f32.gmra.mrb[10].mxu1 %vm100_vm3, %v2980_v56  ;;  %2114 = vmatpush1.bf16.msra.mxu0 %v2931_v30  ;;  %v3055_v34 = vpack.c.bf16 %v427_v31, %v423_v29  ;;  %v451_v54 = vld [vmem:[#allocation6 + $0x1b8] sm:$0xff]  ;;  %v3090_v6 = vpack.c.bf16 %v458_v5, %v454_v4 }
  0x52   :  { %2062 = vmatpush1.bf16.msra.mxu1 %v2982_v57  ;;  %351 = vmatprep.mubr.f32.mxu1 %v2809_v0  ;;  %v455_v61 = vld [vmem:[#allocation6 + $0x1d8] sm:$0xff] }
  0x53   :  { %2064 = vmatprep.subr.bf16.mxu1 %v2985_v58  ;;  %220 = vmatprep.mubr.f32.mxu0 %v2809_v0  ;;  %v459_v62 = vld [vmem:[#allocation6 + $0x1f8] sm:$0xff] }
  0x54   :  { %2116 = vmatprep.subr.bf16.mxu0 %v2934_v33  ;;  %1943 = vmatmul.mubr.msk.f32.gmra.mrb[6].mxu0 %vm100_vm3, %v2943_v42  ;;  %v434_v42 = vld [vmem:[#allocation6 + $0x130] sm:$0xff]  ;;  %v3087_v3 = vpack.c.bf16 %v459_v62, %v455_v61 }
  0x55   :  { %1956 = vmatmul.mubr.msk.f32.gmra.mrb[12].mxu1 %vm100_vm3, %v68_v63  ;;  %2118 = vmatpush1.bf16.msra.mxu0 %v2945_v43  ;;  %v3072_v47 = vpack.c.bf16 %v434_v42, %v430_v41 }
  0x56   :  { %2066 = vmatpush1.bf16.msra.mxu1 %v2999_v1  ;;  %357 = vmatprep.mubr.f32.mxu1 %v2809_v0 }
  0x57   :  { %2068 = vmatprep.subr.bf16.mxu1 %v3002_v2  ;;  %226 = vmatprep.mubr.f32.mxu0 %v2809_v0 }
  0x58   :  { %2120 = vmatprep.subr.bf16.mxu0 %v2948_v44  ;;  %1944 = vmatmul.mubr.msk.f32.gmra.mrb[8].mxu0 %vm100_vm3, %v2962_v49  ;;  %v438_v49 = vld [vmem:[#allocation6 + $0x150] sm:$0xff] }
  0x59   :  { %1957 = vmatmul.mubr.msk.f32.gmra.mrb[14].mxu1 %vm100_vm3, %v69_v7  ;;  %2122 = vmatpush1.bf16.msra.mxu0 %v2964_v50  ;;  %v3078_v55 = vpack.c.bf16 %v442_v52, %v438_v49 }
  0x5a   :  { %2070 = vmatpush1.bf16.msra.mxu1 %v3015_v8  ;;  %528 = vmatprep.mubr.f32.mxu1 %v2809_v0 }
  0x5b   :  { %2072 = vmatprep.subr.bf16.mxu1 %v3018_v9  ;;  %232 = vmatprep.mubr.f32.mxu0 %v2809_v0 }
  0x5c   :  { %2124 = vmatprep.subr.bf16.mxu0 %v2967_v51  ;;  %1945 = vmatmul.mubr.msk.f32.gmra.mrb[10].mxu0 %vm100_vm3, %v2980_v56  ;;  %v3081_v56 = vpack.c.bf16 %v451_v54, %v447_v53 }
  0x5d   :  { %529 = vmatmul.mubr.f32.vlgmr.msra.gmra.mrb[16].mxu1 %v2809_v0  ;;  %2126 = vmatpush1.bf16.msra.mxu0 %v2982_v57 }
  0x5e   :  { %2074 = vmatpush1.bf16.msra.mxu1 %v3028_v15  ;;  %599 = vmatprep.mubr.f32.mxu1 %v2809_v0 }
  0x5f   :  { %2076 = vmatprep.subr.bf16.mxu1 %v3031_v18  ;;  %238 = vmatprep.mubr.f32.mxu0 %v2809_v0 }
  0x60   :  { %2128 = vmatprep.subr.bf16.mxu0 %v2985_v58  ;;  %1946 = vmatmul.mubr.msk.f32.gmra.mrb[12].mxu0 %vm100_vm3, %v68_v63  ;;  %v3084_v63 = vpack.c.bf16 %v450_v60, %v446_v59 }
  0x61   :  { %2130 = vmatpush1.bf16.msra.mxu0 %v2999_v1  ;;  %244 = vmatprep.mubr.f32.mxu0 %v2809_v0 }
  0x62   :  { %2078 = vmatpush1.bf16.msra.mxu1 %v3040_v25  ;;  %2132 = vmatprep.subr.bf16.mxu0 %v3002_v2 }
  0x63   :  { %2080 = vmatprep.subr.bf16.mxu1 %v3044_v26 }
  0x64   :  { %1947 = vmatmul.mubr.msk.f32.gmra.mrb[14].mxu0 %vm100_vm3, %v69_v7  ;;  %v80_v7 = vlaneseq }
  0x65   :  { %2134 = vmatpush1.bf16.msra.mxu0 %v3015_v8  ;;  %694 = vmatprep.mubr.f32.mxu0 %v2809_v0 }
  0x66   :  { %2082 = vmatpush1.bf16.msra.mxu1 %v3052_v32  ;;  %2168 = vmatprep.subr.bf16.mxu0 %v2897_v12  ;;  %v81_v13 = vshrl.u32 %v80_v7, 7 }
  0x67   :  { %2084 = vmatprep.subr.bf16.mxu1 %v3055_v34 }
  0x68   :  { %v82_v14 = vsub.s32 0, %v81_v13  ;;  %v86_v20 = vsub.s32 1, %v81_v13  ;;  %v94_v37 = vsub.s32 3, %v81_v13  ;;  %v90_v41 = vsub.s32 2, %v81_v13 }
  0x6a   :  { %2086 = vmatpush1.bf16.msra.mxu1 %v3062_v39  ;;  %v3113_v21 = vrot.slane %v78_v19, %v82_v14  ;;  %v3115_v22 = vrot.slane %v78_v19, %v86_v20  ;;  %v3119_v38 = vrot.slane %v78_v19, %v94_v37  ;;  %v3122_v49 = vrot.slane %v78_v19, %v90_v41 }
  0x6b   :  { %2088 = vmatprep.subr.bf16.mxu1 %v3065_v40 }
  0x6e   :  { %2090 = vmatpush1.bf16.msra.mxu1 %v3072_v47 }
  0x6f   :  { %2092 = vmatprep.subr.bf16.mxu1 %v3075_v48 }
  0x72   :  { %2094 = vmatpush1.bf16.msra.mxu1 %v3078_v55 }
  0x73   :  { %2096 = vmatprep.subr.bf16.mxu1 %v3081_v56 }
  0x76   :  { %2098 = vmatpush1.bf16.msra.mxu1 %v3084_v63 }
  0x77   :  { %2100 = vmatprep.subr.bf16.mxu1 %v3087_v3 }
  0x7a   :  { %2102 = vmatpush1.bf16.msra.mxu1 %v3090_v6 }
  0x7b   :  { %2136 = vmatprep.subr.bf16.mxu1 %v3018_v9 }
  0x7d   :  { %600 = vmatmul.mubr.f32.vlgmr.msra.gmra.mrb[0].mxu1 %v2809_v0 }
  0x7e   :  { %2138 = vmatpush1.bf16.msra.mxu1 %v3028_v15  ;;  %765 = vmatprep.mubr.f32.mxu1 %v2809_v0 }
  0x7f   :  { %2140 = vmatprep.subr.bf16.mxu1 %v3031_v18 }
  0x82   :  { %2142 = vmatpush1.bf16.msra.mxu1 %v3040_v25 }
  0x83   :  { %2144 = vmatprep.subr.bf16.mxu1 %v3044_v26 }
  0x86   :  { %2146 = vmatpush1.bf16.msra.mxu1 %v3052_v32 }
  0x87   :  { %2148 = vmatprep.subr.bf16.mxu1 %v3055_v34 }
  0x8a   :  { %2150 = vmatpush1.bf16.msra.mxu1 %v3062_v39 }
  0x8b   :  { %2152 = vmatprep.subr.bf16.mxu1 %v3065_v40 }
  0x8e   :  { %2154 = vmatpush1.bf16.msra.mxu1 %v3072_v47 }
  0x8f   :  { %2156 = vmatprep.subr.bf16.mxu1 %v3075_v48 }
  0x92   :  { %2158 = vmatpush1.bf16.msra.mxu1 %v3078_v55 }
  0x93   :  { %2160 = vmatprep.subr.bf16.mxu1 %v3081_v56 }
  0x96   :  { %2162 = vmatpush1.bf16.msra.mxu1 %v3084_v63 }
  0x97   :  { %2164 = vmatprep.subr.bf16.mxu1 %v3087_v3 }
  0x9a   :  { %2166 = vmatpush1.bf16.msra.mxu1 %v3090_v6 }
  0x9b   :  { %2200 = vmatprep.subr.bf16.mxu1 %v3018_v9 }
 0x11b   :  { %v204_v10 = vpop.f32.mrb[0].mxu0 }
 0x11c   :  { %v206_v11 = vpop.f32.mrb[1].mxu0  ;;  %v205_v27 = vadd.f32 %v204_v10, %v3113_v21 }
 0x11d   :  { %v207_v28 = vadd.f32 %v206_v11, %v3115_v22 }
 0x130   :  { %v530_v29 = vpop.f32.mrb[16].mxu1 }
 0x131   :  { %v606_v31 = vadd.f32 %v530_v29, %v205_v27  ;;  %v532_v35 = vpop.f32.mrb[17].mxu1 }
 0x132   :  { %v607_v36 = vadd.f32 %v532_v35, %v207_v28 }
 0x134   :  { %2654 = vtanh.f32 %v607_v36 }
 0x135   :  { %2656 = vtanh.f32 %v606_v31 }
 0x13e   :  { %v2655_v52 = vpop.eup %2654 }
 0x13f   :  { %v2657_v53 = vpop.eup %2656  ;;  %v616_v54 = vadd.f32 1.0, %v2655_v52 }
 0x140   :  { %v614_v60 = vadd.f32 1.0, %v2657_v53 }
 0x141   :  { %v617_v61 = vmul.f32 0.5, %v616_v54 }
 0x142   :  { %v615_v62 = vmul.f32 0.5, %v614_v60 }
 0x143   :  { %v620_v5 = vmul.f32 0.0, %v617_v61 }
 0x150   :  { %v601_v42 = vpop.f32.mrb[0].mxu1 }
 0x151   :  { %v603_v45 = vpop.f32.mrb[1].mxu1  ;;  %v2601_v59 = vadd.f32 %v601_v42, %v3122_v49 }
 0x152   :  { %v2602_v46 = vadd.f32 %v603_v45, %v3119_v38 }
 0x154   :  { %2658 = vtanh.f32 %v2602_v46 }
 0x155   :  { %2660 = vtanh.f32 %v2601_v59 }
 0x15e   :  { %v2659_v4 = vpop.eup %2658 }
 0x15f   :  { %v621_v7 = vmul.f32 %v2659_v4, %v615_v62  ;;  %v2661_v11 = vpop.eup %2660 }
 0x160   :  { %v618_v13 = vadd.f32 1.0, %v2661_v11 }
 0x161   :  { %v3125_v10 = vadd.f32 %v621_v7, %v620_v5 }
 0x162   :  { %v619_v14 = vmul.f32 0.5, %v618_v13 }
 0x163   :  { %2662 = vtanh.f32 %v3125_v10 }
 0x16d   :  { %v2663_v19 = vpop.eup %2662 }
 0x16e   :  { %v3128_v20 = vmul.f32 %v2663_v19, %v619_v14 }
 0x170   :  { %695 = vmatmul.mubr.f32.vlgmr.msra.gmra.mrb[2].mxu0 %v3128_v20  ;;  %766 = vmatmul.mubr.f32.vlgmr.msra.gmra.mrb[2].mxu1 %v3128_v20 }
 0x171   :  { %2170 = vmatpush1.bf16.msra.mxu0 %v2904_v16  ;;  %2202 = vmatpush1.bf16.msra.mxu1 %v3028_v15 }
 0x172   :  { %2172 = vmatprep.subr.bf16.mxu0 %v2907_v17  ;;  %2204 = vmatprep.subr.bf16.mxu1 %v3031_v18 }
 0x173   :  { %860 = vmatprep.mubr.f32.mxu0 %v2809_v0  ;;  %931 = vmatprep.mubr.f32.mxu1 %v2809_v0 }
 0x175   :  { %2174 = vmatpush1.bf16.msra.mxu0 %v2917_v23  ;;  %2206 = vmatpush1.bf16.msra.mxu1 %v3040_v25 }
 0x176   :  { %2176 = vmatprep.subr.bf16.mxu0 %v2920_v24  ;;  %2208 = vmatprep.subr.bf16.mxu1 %v3044_v26 }
 0x179   :  { %2178 = vmatpush1.bf16.msra.mxu0 %v2931_v30  ;;  %2210 = vmatpush1.bf16.msra.mxu1 %v3052_v32 }
 0x17a   :  { %2180 = vmatprep.subr.bf16.mxu0 %v2934_v33  ;;  %2212 = vmatprep.subr.bf16.mxu1 %v3055_v34 }
 0x17d   :  { %2182 = vmatpush1.bf16.msra.mxu0 %v2945_v43  ;;  %2214 = vmatpush1.bf16.msra.mxu1 %v3062_v39 }
 0x17e   :  { %2184 = vmatprep.subr.bf16.mxu0 %v2948_v44  ;;  %2216 = vmatprep.subr.bf16.mxu1 %v3065_v40 }
 0x181   :  { %2186 = vmatpush1.bf16.msra.mxu0 %v2964_v50  ;;  %2218 = vmatpush1.bf16.msra.mxu1 %v3072_v47 }
 0x182   :  { %2188 = vmatprep.subr.bf16.mxu0 %v2967_v51  ;;  %2220 = vmatprep.subr.bf16.mxu1 %v3075_v48 }
 0x185   :  { %2190 = vmatpush1.bf16.msra.mxu0 %v2982_v57  ;;  %2222 = vmatpush1.bf16.msra.mxu1 %v3078_v55 }
 0x186   :  { %2192 = vmatprep.subr.bf16.mxu0 %v2985_v58  ;;  %2224 = vmatprep.subr.bf16.mxu1 %v3081_v56 }
 0x189   :  { %2194 = vmatpush1.bf16.msra.mxu0 %v2999_v1  ;;  %2226 = vmatpush1.bf16.msra.mxu1 %v3084_v63 }
 0x18a   :  { %2196 = vmatprep.subr.bf16.mxu0 %v3002_v2  ;;  %2228 = vmatprep.subr.bf16.mxu1 %v3087_v3 }
 0x18d   :  { %2198 = vmatpush1.bf16.msra.mxu0 %v3015_v8  ;;  %2230 = vmatpush1.bf16.msra.mxu1 %v3090_v6 }
 0x18e   :  { %2232 = vmatprep.subr.bf16.mxu0 %v2897_v12  ;;  %2264 = vmatprep.subr.bf16.mxu1 %v3018_v9 }
 0x243   :  { %v696_v27 = vpop.f32.mrb[2].mxu0  ;;  %v767_v28 = vpop.f32.mrb[2].mxu1 }
 0x244   :  { %v2587_v29 = vadd.f32 %v696_v27, %v3113_v21  ;;  %v698_v31 = vpop.f32.mrb[3].mxu0  ;;  %v769_v35 = vpop.f32.mrb[3].mxu1  ;;  %v2603_v41 = vadd.f32 %v767_v28, %v3122_v49 }
 0x245   :  { %v2588_v36 = vadd.f32 %v698_v31, %v3115_v22  ;;  %v2604_v37 = vadd.f32 %v769_v35, %v3119_v38 }
 0x246   :  { %2664 = vtanh.f32 %v2587_v29 }
 0x247   :  { %2666 = vtanh.f32 %v2588_v36 }
 0x248   :  { %2668 = vtanh.f32 %v2604_v37 }
 0x249   :  { %2670 = vtanh.f32 %v2603_v41 }
 0x250   :  { %v2665_v42 = vpop.eup %2664 }
 0x251   :  { %v780_v45 = vadd.f32 1.0, %v2665_v42  ;;  %v2667_v46 = vpop.eup %2666 }
 0x252   :  { %v782_v53 = vadd.f32 1.0, %v2667_v46  ;;  %v2669_v54 = vpop.eup %2668 }
 0x253   :  { %v781_v52 = vmul.f32 0.5, %v780_v45  ;;  %v2671_v4 = vpop.eup %2670 }
 0x254   :  { %v783_v59 = vmul.f32 0.5, %v782_v53  ;;  %v784_v5 = vadd.f32 1.0, %v2671_v4 }
 0x255   :  { %v787_v60 = vmul.f32 %v2669_v54, %v781_v52 }
 0x256   :  { %v786_v61 = vmul.f32 %v783_v59, %v3125_v10  ;;  %v785_v7 = vmul.f32 0.5, %v784_v5 }
 0x258   :  { %v3171_v62 = vadd.f32 %v787_v60, %v786_v61 }
 0x25a   :  { %2672 = vtanh.f32 %v3171_v62 }
 0x264   :  { %v2673_v11 = vpop.eup %2672 }
 0x265   :  { %v3174_v13 = vmul.f32 %v2673_v11, %v785_v7 }
 0x267   :  { %861 = vmatmul.mubr.f32.vlgmr.msra.gmra.mrb[4].mxu0 %v3174_v13  ;;  %932 = vmatmul.mubr.f32.vlgmr.msra.gmra.mrb[4].mxu1 %v3174_v13 }
 0x268   :  { %2234 = vmatpush1.bf16.msra.mxu0 %v2904_v16  ;;  %2266 = vmatpush1.bf16.msra.mxu1 %v3028_v15 }
 0x269   :  { %2236 = vmatprep.subr.bf16.mxu0 %v2907_v17  ;;  %2268 = vmatprep.subr.bf16.mxu1 %v3031_v18 }
 0x26a   :  { %1026 = vmatprep.mubr.f32.mxu0 %v2809_v0  ;;  %1097 = vmatprep.mubr.f32.mxu1 %v2809_v0 }
 0x26c   :  { %2238 = vmatpush1.bf16.msra.mxu0 %v2917_v23  ;;  %2270 = vmatpush1.bf16.msra.mxu1 %v3040_v25 }
 0x26d   :  { %2240 = vmatprep.subr.bf16.mxu0 %v2920_v24  ;;  %2272 = vmatprep.subr.bf16.mxu1 %v3044_v26 }
 0x270   :  { %2242 = vmatpush1.bf16.msra.mxu0 %v2931_v30  ;;  %2274 = vmatpush1.bf16.msra.mxu1 %v3052_v32 }
 0x271   :  { %2244 = vmatprep.subr.bf16.mxu0 %v2934_v33  ;;  %2276 = vmatprep.subr.bf16.mxu1 %v3055_v34 }
 0x274   :  { %2246 = vmatpush1.bf16.msra.mxu0 %v2945_v43  ;;  %2278 = vmatpush1.bf16.msra.mxu1 %v3062_v39 }
 0x275   :  { %2248 = vmatprep.subr.bf16.mxu0 %v2948_v44  ;;  %2280 = vmatprep.subr.bf16.mxu1 %v3065_v40 }
 0x278   :  { %2250 = vmatpush1.bf16.msra.mxu0 %v2964_v50  ;;  %2282 = vmatpush1.bf16.msra.mxu1 %v3072_v47 }
 0x279   :  { %2252 = vmatprep.subr.bf16.mxu0 %v2967_v51  ;;  %2284 = vmatprep.subr.bf16.mxu1 %v3075_v48 }
 0x27c   :  { %2254 = vmatpush1.bf16.msra.mxu0 %v2982_v57  ;;  %2286 = vmatpush1.bf16.msra.mxu1 %v3078_v55 }
 0x27d   :  { %2256 = vmatprep.subr.bf16.mxu0 %v2985_v58  ;;  %2288 = vmatprep.subr.bf16.mxu1 %v3081_v56 }
 0x280   :  { %2258 = vmatpush1.bf16.msra.mxu0 %v2999_v1  ;;  %2290 = vmatpush1.bf16.msra.mxu1 %v3084_v63 }
 0x281   :  { %2260 = vmatprep.subr.bf16.mxu0 %v3002_v2  ;;  %2292 = vmatprep.subr.bf16.mxu1 %v3087_v3 }
 0x284   :  { %2262 = vmatpush1.bf16.msra.mxu0 %v3015_v8  ;;  %2294 = vmatpush1.bf16.msra.mxu1 %v3090_v6 }
 0x285   :  { %2296 = vmatprep.subr.bf16.mxu0 %v2897_v12  ;;  %2328 = vmatprep.subr.bf16.mxu1 %v3018_v9 }
 0x33a   :  { %v862_v10 = vpop.f32.mrb[4].mxu0  ;;  %v933_v14 = vpop.f32.mrb[4].mxu1 }
 0x33b   :  { %v2589_v19 = vadd.f32 %v862_v10, %v3113_v21  ;;  %v864_v27 = vpop.f32.mrb[5].mxu0  ;;  %v935_v28 = vpop.f32.mrb[5].mxu1  ;;  %v2605_v35 = vadd.f32 %v933_v14, %v3122_v49 }
 0x33c   :  { %v2590_v29 = vadd.f32 %v864_v27, %v3115_v22  ;;  %v2606_v31 = vadd.f32 %v935_v28, %v3119_v38 }
 0x33d   :  { %2674 = vtanh.f32 %v2589_v19 }
 0x33e   :  { %2676 = vtanh.f32 %v2590_v29 }
 0x33f   :  { %2678 = vtanh.f32 %v2606_v31 }
 0x340   :  { %2680 = vtanh.f32 %v2605_v35 }
 0x347   :  { %v2675_v36 = vpop.eup %2674 }
 0x348   :  { %v946_v37 = vadd.f32 1.0, %v2675_v36  ;;  %v2677_v41 = vpop.eup %2676 }
 0x349   :  { %v948_v45 = vadd.f32 1.0, %v2677_v41  ;;  %v2679_v46 = vpop.eup %2678 }
 0x34a   :  { %v947_v42 = vmul.f32 0.5, %v946_v37  ;;  %v2681_v60 = vpop.eup %2680 }
 0x34b   :  { %v949_v52 = vmul.f32 0.5, %v948_v45  ;;  %v950_v61 = vadd.f32 1.0, %v2681_v60 }
 0x34c   :  { %v953_v53 = vmul.f32 %v2679_v46, %v947_v42 }
 0x34d   :  { %v952_v54 = vmul.f32 %v949_v52, %v3171_v62  ;;  %v951_v4 = vmul.f32 0.5, %v950_v61 }
 0x34f   :  { %v3217_v59 = vadd.f32 %v953_v53, %v952_v54 }
 0x351   :  { %2682 = vtanh.f32 %v3217_v59 }
 0x35b   :  { %v2683_v5 = vpop.eup %2682 }
 0x35c   :  { %v3220_v7 = vmul.f32 %v2683_v5, %v951_v4 }
 0x35e   :  { %1027 = vmatmul.mubr.f32.vlgmr.msra.gmra.mrb[6].mxu0 %v3220_v7  ;;  %1098 = vmatmul.mubr.f32.vlgmr.msra.gmra.mrb[6].mxu1 %v3220_v7 }
 0x35f   :  { %2298 = vmatpush1.bf16.msra.mxu0 %v2904_v16  ;;  %2330 = vmatpush1.bf16.msra.mxu1 %v3028_v15 }
 0x360   :  { %2300 = vmatprep.subr.bf16.mxu0 %v2907_v17  ;;  %2332 = vmatprep.subr.bf16.mxu1 %v3031_v18 }
 0x361   :  { %1192 = vmatprep.mubr.f32.mxu0 %v2809_v0  ;;  %1263 = vmatprep.mubr.f32.mxu1 %v2809_v0 }
 0x363   :  { %2302 = vmatpush1.bf16.msra.mxu0 %v2917_v23  ;;  %2334 = vmatpush1.bf16.msra.mxu1 %v3040_v25 }
 0x364   :  { %2304 = vmatprep.subr.bf16.mxu0 %v2920_v24  ;;  %2336 = vmatprep.subr.bf16.mxu1 %v3044_v26 }
 0x367   :  { %2306 = vmatpush1.bf16.msra.mxu0 %v2931_v30  ;;  %2338 = vmatpush1.bf16.msra.mxu1 %v3052_v32 }
 0x368   :  { %2308 = vmatprep.subr.bf16.mxu0 %v2934_v33  ;;  %2340 = vmatprep.subr.bf16.mxu1 %v3055_v34 }
 0x36b   :  { %2310 = vmatpush1.bf16.msra.mxu0 %v2945_v43  ;;  %2342 = vmatpush1.bf16.msra.mxu1 %v3062_v39 }
 0x36c   :  { %2312 = vmatprep.subr.bf16.mxu0 %v2948_v44  ;;  %2344 = vmatprep.subr.bf16.mxu1 %v3065_v40 }
 0x36f   :  { %2314 = vmatpush1.bf16.msra.mxu0 %v2964_v50  ;;  %2346 = vmatpush1.bf16.msra.mxu1 %v3072_v47 }
 0x370   :  { %2316 = vmatprep.subr.bf16.mxu0 %v2967_v51  ;;  %2348 = vmatprep.subr.bf16.mxu1 %v3075_v48 }
 0x373   :  { %2318 = vmatpush1.bf16.msra.mxu0 %v2982_v57  ;;  %2350 = vmatpush1.bf16.msra.mxu1 %v3078_v55 }
 0x374   :  { %2320 = vmatprep.subr.bf16.mxu0 %v2985_v58  ;;  %2352 = vmatprep.subr.bf16.mxu1 %v3081_v56 }
 0x377   :  { %2322 = vmatpush1.bf16.msra.mxu0 %v2999_v1  ;;  %2354 = vmatpush1.bf16.msra.mxu1 %v3084_v63 }
 0x378   :  { %2324 = vmatprep.subr.bf16.mxu0 %v3002_v2  ;;  %2356 = vmatprep.subr.bf16.mxu1 %v3087_v3 }
 0x37b   :  { %2326 = vmatpush1.bf16.msra.mxu0 %v3015_v8  ;;  %2358 = vmatpush1.bf16.msra.mxu1 %v3090_v6 }
 0x37c   :  { %2360 = vmatprep.subr.bf16.mxu0 %v2897_v12  ;;  %2392 = vmatprep.subr.bf16.mxu1 %v3018_v9 }
 0x431   :  { %v1028_v62 = vpop.f32.mrb[6].mxu0  ;;  %v1099_v11 = vpop.f32.mrb[6].mxu1 }
 0x432   :  { %v2591_v10 = vadd.f32 %v1028_v62, %v3113_v21  ;;  %v1030_v14 = vpop.f32.mrb[7].mxu0  ;;  %v1101_v19 = vpop.f32.mrb[7].mxu1  ;;  %v2607_v29 = vadd.f32 %v1099_v11, %v3122_v49 }
 0x433   :  { %v2592_v27 = vadd.f32 %v1030_v14, %v3115_v22  ;;  %v2608_v28 = vadd.f32 %v1101_v19, %v3119_v38 }
 0x434   :  { %2684 = vtanh.f32 %v2591_v10 }
 0x435   :  { %2686 = vtanh.f32 %v2592_v27 }
 0x436   :  { %2688 = vtanh.f32 %v2608_v28 }
 0x437   :  { %2690 = vtanh.f32 %v2607_v29 }
 0x43e   :  { %v2685_v31 = vpop.eup %2684 }
 0x43f   :  { %v1112_v35 = vadd.f32 1.0, %v2685_v31  ;;  %v2687_v36 = vpop.eup %2686 }
 0x440   :  { %v1114_v41 = vadd.f32 1.0, %v2687_v36  ;;  %v2689_v42 = vpop.eup %2688 }
 0x441   :  { %v1113_v37 = vmul.f32 0.5, %v1112_v35  ;;  %v2691_v54 = vpop.eup %2690 }
 0x442   :  { %v1115_v45 = vmul.f32 0.5, %v1114_v41  ;;  %v1116_v60 = vadd.f32 1.0, %v2691_v54 }
 0x443   :  { %v1119_v46 = vmul.f32 %v2689_v42, %v1113_v37 }
 0x444   :  { %v1118_v52 = vmul.f32 %v1115_v45, %v3217_v59  ;;  %v1117_v61 = vmul.f32 0.5, %v1116_v60 }
 0x446   :  { %v3263_v53 = vadd.f32 %v1119_v46, %v1118_v52 }
 0x448   :  { %2692 = vtanh.f32 %v3263_v53 }
 0x452   :  { %v2693_v4 = vpop.eup %2692 }
 0x453   :  { %v3266_v5 = vmul.f32 %v2693_v4, %v1117_v61 }
 0x455   :  { %1193 = vmatmul.mubr.f32.vlgmr.msra.gmra.mrb[8].mxu0 %v3266_v5  ;;  %1264 = vmatmul.mubr.f32.vlgmr.msra.gmra.mrb[8].mxu1 %v3266_v5 }
 0x456   :  { %2362 = vmatpush1.bf16.msra.mxu0 %v2904_v16  ;;  %2394 = vmatpush1.bf16.msra.mxu1 %v3028_v15 }
 0x457   :  { %2364 = vmatprep.subr.bf16.mxu0 %v2907_v17  ;;  %2396 = vmatprep.subr.bf16.mxu1 %v3031_v18 }
 0x458   :  { %1358 = vmatprep.mubr.f32.mxu0 %v2809_v0  ;;  %1429 = vmatprep.mubr.f32.mxu1 %v2809_v0 }
 0x45a   :  { %2366 = vmatpush1.bf16.msra.mxu0 %v2917_v23  ;;  %2398 = vmatpush1.bf16.msra.mxu1 %v3040_v25 }
 0x45b   :  { %2368 = vmatprep.subr.bf16.mxu0 %v2920_v24  ;;  %2400 = vmatprep.subr.bf16.mxu1 %v3044_v26 }
 0x45e   :  { %2370 = vmatpush1.bf16.msra.mxu0 %v2931_v30  ;;  %2402 = vmatpush1.bf16.msra.mxu1 %v3052_v32 }
 0x45f   :  { %2372 = vmatprep.subr.bf16.mxu0 %v2934_v33  ;;  %2404 = vmatprep.subr.bf16.mxu1 %v3055_v34 }
 0x462   :  { %2374 = vmatpush1.bf16.msra.mxu0 %v2945_v43  ;;  %2406 = vmatpush1.bf16.msra.mxu1 %v3062_v39 }
 0x463   :  { %2376 = vmatprep.subr.bf16.mxu0 %v2948_v44  ;;  %2408 = vmatprep.subr.bf16.mxu1 %v3065_v40 }
 0x466   :  { %2378 = vmatpush1.bf16.msra.mxu0 %v2964_v50  ;;  %2410 = vmatpush1.bf16.msra.mxu1 %v3072_v47 }
 0x467   :  { %2380 = vmatprep.subr.bf16.mxu0 %v2967_v51  ;;  %2412 = vmatprep.subr.bf16.mxu1 %v3075_v48 }
 0x46a   :  { %2382 = vmatpush1.bf16.msra.mxu0 %v2982_v57  ;;  %2414 = vmatpush1.bf16.msra.mxu1 %v3078_v55 }
 0x46b   :  { %2384 = vmatprep.subr.bf16.mxu0 %v2985_v58  ;;  %2416 = vmatprep.subr.bf16.mxu1 %v3081_v56 }
 0x46e   :  { %2386 = vmatpush1.bf16.msra.mxu0 %v2999_v1  ;;  %2418 = vmatpush1.bf16.msra.mxu1 %v3084_v63 }
 0x46f   :  { %2388 = vmatprep.subr.bf16.mxu0 %v3002_v2  ;;  %2420 = vmatprep.subr.bf16.mxu1 %v3087_v3 }
 0x472   :  { %2390 = vmatpush1.bf16.msra.mxu0 %v3015_v8  ;;  %2422 = vmatpush1.bf16.msra.mxu1 %v3090_v6 }
 0x473   :  { %2424 = vmatprep.subr.bf16.mxu0 %v2897_v12  ;;  %2456 = vmatprep.subr.bf16.mxu1 %v3018_v9 }
 0x528   :  { %v1194_v59 = vpop.f32.mrb[8].mxu0  ;;  %v1265_v62 = vpop.f32.mrb[8].mxu1 }
 0x529   :  { %v2593_v11 = vadd.f32 %v1194_v59, %v3113_v21  ;;  %v1196_v10 = vpop.f32.mrb[9].mxu0  ;;  %v1267_v14 = vpop.f32.mrb[9].mxu1  ;;  %v2609_v28 = vadd.f32 %v1265_v62, %v3122_v49 }
 0x52a   :  { %v2594_v19 = vadd.f32 %v1196_v10, %v3115_v22  ;;  %v2610_v27 = vadd.f32 %v1267_v14, %v3119_v38 }
 0x52b   :  { %2694 = vtanh.f32 %v2593_v11 }
 0x52c   :  { %2696 = vtanh.f32 %v2594_v19 }
 0x52d   :  { %2698 = vtanh.f32 %v2610_v27 }
 0x52e   :  { %2700 = vtanh.f32 %v2609_v28 }
 0x535   :  { %v2695_v29 = vpop.eup %2694 }
 0x536   :  { %v1278_v31 = vadd.f32 1.0, %v2695_v29  ;;  %v2697_v35 = vpop.eup %2696 }
 0x537   :  { %v1280_v37 = vadd.f32 1.0, %v2697_v35  ;;  %v2699_v41 = vpop.eup %2698 }
 0x538   :  { %v1279_v36 = vmul.f32 0.5, %v1278_v31  ;;  %v2701_v54 = vpop.eup %2700 }
 0x539   :  { %v1281_v42 = vmul.f32 0.5, %v1280_v37  ;;  %v1282_v60 = vadd.f32 1.0, %v2701_v54 }
 0x53a   :  { %v1285_v45 = vmul.f32 %v2699_v41, %v1279_v36 }
 0x53b   :  { %v1284_v46 = vmul.f32 %v1281_v42, %v3263_v53  ;;  %v1283_v61 = vmul.f32 0.5, %v1282_v60 }
 0x53d   :  { %v3309_v52 = vadd.f32 %v1285_v45, %v1284_v46 }
 0x53f   :  { %2702 = vtanh.f32 %v3309_v52 }
 0x549   :  { %v2703_v4 = vpop.eup %2702 }
 0x54a   :  { %v3312_v59 = vmul.f32 %v2703_v4, %v1283_v61 }
 0x54c   :  { %1359 = vmatmul.mubr.f32.vlgmr.msra.gmra.mrb[10].mxu0 %v3312_v59  ;;  %1430 = vmatmul.mubr.f32.vlgmr.msra.gmra.mrb[10].mxu1 %v3312_v59 }
 0x54d   :  { %2426 = vmatpush1.bf16.msra.mxu0 %v2904_v16  ;;  %2458 = vmatpush1.bf16.msra.mxu1 %v3028_v15 }
 0x54e   :  { %2428 = vmatprep.subr.bf16.mxu0 %v2907_v17  ;;  %2460 = vmatprep.subr.bf16.mxu1 %v3031_v18 }
 0x54f   :  { %1524 = vmatprep.mubr.f32.mxu0 %v2809_v0  ;;  %1595 = vmatprep.mubr.f32.mxu1 %v2809_v0 }
 0x551   :  { %2430 = vmatpush1.bf16.msra.mxu0 %v2917_v23  ;;  %2462 = vmatpush1.bf16.msra.mxu1 %v3040_v25 }
 0x552   :  { %2432 = vmatprep.subr.bf16.mxu0 %v2920_v24  ;;  %2464 = vmatprep.subr.bf16.mxu1 %v3044_v26 }
 0x555   :  { %2434 = vmatpush1.bf16.msra.mxu0 %v2931_v30  ;;  %2466 = vmatpush1.bf16.msra.mxu1 %v3052_v32 }
 0x556   :  { %2436 = vmatprep.subr.bf16.mxu0 %v2934_v33  ;;  %2468 = vmatprep.subr.bf16.mxu1 %v3055_v34 }
 0x559   :  { %2438 = vmatpush1.bf16.msra.mxu0 %v2945_v43  ;;  %2470 = vmatpush1.bf16.msra.mxu1 %v3062_v39 }
 0x55a   :  { %2440 = vmatprep.subr.bf16.mxu0 %v2948_v44  ;;  %2472 = vmatprep.subr.bf16.mxu1 %v3065_v40 }
 0x55d   :  { %2442 = vmatpush1.bf16.msra.mxu0 %v2964_v50  ;;  %2474 = vmatpush1.bf16.msra.mxu1 %v3072_v47 }
 0x55e   :  { %2444 = vmatprep.subr.bf16.mxu0 %v2967_v51  ;;  %2476 = vmatprep.subr.bf16.mxu1 %v3075_v48 }
 0x561   :  { %2446 = vmatpush1.bf16.msra.mxu0 %v2982_v57  ;;  %2478 = vmatpush1.bf16.msra.mxu1 %v3078_v55 }
 0x562   :  { %2448 = vmatprep.subr.bf16.mxu0 %v2985_v58  ;;  %2480 = vmatprep.subr.bf16.mxu1 %v3081_v56 }
 0x565   :  { %2450 = vmatpush1.bf16.msra.mxu0 %v2999_v1  ;;  %2482 = vmatpush1.bf16.msra.mxu1 %v3084_v63 }
 0x566   :  { %2452 = vmatprep.subr.bf16.mxu0 %v3002_v2  ;;  %2484 = vmatprep.subr.bf16.mxu1 %v3087_v3 }
 0x569   :  { %2454 = vmatpush1.bf16.msra.mxu0 %v3015_v8  ;;  %2486 = vmatpush1.bf16.msra.mxu1 %v3090_v6 }
 0x56a   :  { %2488 = vmatprep.subr.bf16.mxu0 %v2897_v12  ;;  %2520 = vmatprep.subr.bf16.mxu1 %v3018_v9 }
 0x61f   :  { %v1360_v53 = vpop.f32.mrb[10].mxu0  ;;  %v1431_v62 = vpop.f32.mrb[10].mxu1 }
 0x620   :  { %v2595_v11 = vadd.f32 %v1360_v53, %v3113_v21  ;;  %v1362_v10 = vpop.f32.mrb[11].mxu0  ;;  %v1433_v14 = vpop.f32.mrb[11].mxu1  ;;  %v2611_v28 = vadd.f32 %v1431_v62, %v3122_v49  ;;  %v1802_v53 = vld [vmem:[%s3492_s4 + $0x30] sm:$0xff]  ;;  %v1803_v62 = vld [vmem:[%s3492_s4 + $0x38] sm:$0xff] }
 0x621   :  { %v2596_v19 = vadd.f32 %v1362_v10, %v3115_v22  ;;  %v2612_v27 = vadd.f32 %v1433_v14, %v3119_v38  ;;  %v1804_v10 = vld [vmem:[%s3492_s4 + $0x40] sm:$0xff] }
 0x622   :  { %2704 = vtanh.f32 %v2595_v11  ;;  %v2563_v11 = vpack.c.bf16 %v1803_v62, %v1802_v53 }
 0x623   :  { %2706 = vtanh.f32 %v2596_v19  ;;  %v1806_v19 = vld [vmem:[%s3492_s4 + $0x50] sm:$0xff] }
 0x624   :  { %2708 = vtanh.f32 %v2612_v27  ;;  %v1807_v27 = vld [vmem:[%s3492_s4 + $0x58] sm:$0xff] }
 0x625   :  { %2710 = vtanh.f32 %v2611_v28  ;;  %v2571_v28 = vpack.c.bf16 %v1807_v27, %v1806_v19 }
 0x62c   :  { %v2705_v29 = vpop.eup %2704 }
 0x62d   :  { %v1444_v31 = vadd.f32 1.0, %v2705_v29  ;;  %v2707_v12 = vpop.eup %2706  ;;  %v1808_v29 = vld [vmem:[%s3492_s4 + $0x60] sm:$0xff] }
 0x62e   :  { %v1446_v9 = vadd.f32 1.0, %v2707_v12  ;;  %v2709_v36 = vpop.eup %2708 }
 0x62f   :  { %v1445_v35 = vmul.f32 0.5, %v1444_v31  ;;  %v2711_v46 = vpop.eup %2710  ;;  %v1809_v31 = vld [vmem:[%s3492_s4 + $0x68] sm:$0xff] }
 0x630   :  { %v1447_v37 = vmul.f32 0.5, %v1446_v9  ;;  %v1448_v54 = vadd.f32 1.0, %v2711_v46  ;;  %v2575_v12 = vpack.c.bf16 %v1809_v31, %v1808_v29  ;;  %v1811_v9 = vld [vmem:[%s3492_s4 + $0x78] sm:$0xff] }
 0x631   :  { %v1451_v41 = vmul.f32 %v2709_v36, %v1445_v35  ;;  %v1810_v35 = vld [vmem:[%s3492_s4 + $0x70] sm:$0xff] }
 0x632   :  { %v1450_v42 = vmul.f32 %v1447_v37, %v3309_v52  ;;  %v1449_v60 = vmul.f32 0.5, %v1448_v54  ;;  %v2579_v36 = vpack.c.bf16 %v1811_v9, %v1810_v35 }
 0x634   :  { %v3355_v45 = vadd.f32 %v1451_v41, %v1450_v42 }
 0x636   :  { %2712 = vtanh.f32 %v3355_v45 }
 0x640   :  { %v2713_v61 = vpop.eup %2712 }
 0x641   :  { %v3358_v4 = vmul.f32 %v2713_v61, %v1449_v60 }
 0x643   :  { %1525 = vmatmul.mubr.f32.vlgmr.msra.gmra.mrb[12].mxu0 %v3358_v4  ;;  %1596 = vmatmul.mubr.f32.vlgmr.msra.gmra.mrb[12].mxu1 %v3358_v4 }
 0x644   :  { %2490 = vmatpush1.bf16.msra.mxu0 %v2904_v16  ;;  %2522 = vmatpush1.bf16.msra.mxu1 %v3028_v15  ;;  %v1797_v16 = vld [vmem:[%s3492_s4 + $0x8] sm:$0xff] }
 0x645   :  { %2492 = vmatprep.subr.bf16.mxu0 %v2907_v17  ;;  %2524 = vmatprep.subr.bf16.mxu1 %v3031_v18 }
 0x646   :  { %1690 = vmatprep.mubr.f32.mxu0 %v2809_v0  ;;  %1761 = vmatprep.mubr.f32.mxu1 %v2809_v0  ;;  %v1796_v0 = vld [vmem:[%s3492_s4] sm:$0xff] }
 0x647   :  { %v2551_v17 = vpack.c.bf16 %v1797_v16, %v1796_v0 }
 0x648   :  { %2494 = vmatpush1.bf16.msra.mxu0 %v2917_v23  ;;  %2526 = vmatpush1.bf16.msra.mxu1 %v3040_v25 }
 0x649   :  { %2496 = vmatprep.subr.bf16.mxu0 %v2920_v24  ;;  %2528 = vmatprep.subr.bf16.mxu1 %v3044_v26 }
 0x64c   :  { %2498 = vmatpush1.bf16.msra.mxu0 %v2931_v30  ;;  %2530 = vmatpush1.bf16.msra.mxu1 %v3052_v32 }
 0x64d   :  { %2500 = vmatprep.subr.bf16.mxu0 %v2934_v33  ;;  %2532 = vmatprep.subr.bf16.mxu1 %v3055_v34 }
 0x650   :  { %2502 = vmatpush1.bf16.msra.mxu0 %v2945_v43  ;;  %2534 = vmatpush1.bf16.msra.mxu1 %v3062_v39 }
 0x651   :  { %2504 = vmatprep.subr.bf16.mxu0 %v2948_v44  ;;  %2536 = vmatprep.subr.bf16.mxu1 %v3065_v40  ;;  %v1798_v40 = vld [vmem:[%s3492_s4 + $0x10] sm:$0xff] }
 0x654   :  { %2506 = vmatpush1.bf16.msra.mxu0 %v2964_v50  ;;  %2538 = vmatpush1.bf16.msra.mxu1 %v3072_v47  ;;  %v1799_v47 = vld [vmem:[%s3492_s4 + $0x18] sm:$0xff] }
 0x655   :  { %2508 = vmatprep.subr.bf16.mxu0 %v2967_v51  ;;  %2540 = vmatprep.subr.bf16.mxu1 %v3075_v48 }
 0x658   :  { %2510 = vmatpush1.bf16.msra.mxu0 %v2982_v57  ;;  %2542 = vmatpush1.bf16.msra.mxu1 %v3078_v55 }
 0x659   :  { %2512 = vmatprep.subr.bf16.mxu0 %v2985_v58  ;;  %2544 = vmatprep.subr.bf16.mxu1 %v3081_v56 }
 0x65c   :  { %2514 = vmatpush1.bf16.msra.mxu0 %v2999_v1  ;;  %2546 = vmatpush1.bf16.msra.mxu1 %v3084_v63  ;;  %v2555_v63 = vpack.c.bf16 %v1799_v47, %v1798_v40 }
 0x65d   :  { %2516 = vmatprep.subr.bf16.mxu0 %v3002_v2  ;;  %2548 = vmatprep.subr.bf16.mxu1 %v3087_v3  ;;  %v1800_v3 = vld [vmem:[%s3492_s4 + $0x20] sm:$0xff] }
 0x660   :  { %2518 = vmatpush1.bf16.msra.mxu0 %v3015_v8  ;;  %2550 = vmatpush1.bf16.msra.mxu1 %v3090_v6  ;;  %v1801_v6 = vld [vmem:[%s3492_s4 + $0x28] sm:$0xff] }
 0x661   :  { %2552 = vmatprep.subr.bf16.mxu0 %v2551_v17  ;;  %v2559_v52 = vpack.c.bf16 %v1801_v6, %v1800_v3 }
 0x716   :  { %v1526_v23 = vpop.f32.mrb[12].mxu0  ;;  %v1597_v24 = vpop.f32.mrb[12].mxu1 }
 0x717   :  { %v2597_v30 = vadd.f32 %v1526_v23, %v3113_v21  ;;  %v1528_v33 = vpop.f32.mrb[13].mxu0  ;;  %v1599_v43 = vpop.f32.mrb[13].mxu1  ;;  %v2613_v51 = vadd.f32 %v1597_v24, %v3122_v49 }
 0x718   :  { %v2598_v44 = vadd.f32 %v1528_v33, %v3115_v22  ;;  %v2614_v50 = vadd.f32 %v1599_v43, %v3119_v38 }
 0x719   :  { %2714 = vtanh.f32 %v2597_v30 }
 0x71a   :  { %2716 = vtanh.f32 %v2598_v44 }
 0x71b   :  { %2718 = vtanh.f32 %v2614_v50 }
 0x71c   :  { %2720 = vtanh.f32 %v2613_v51 }
 0x723   :  { %v2715_v57 = vpop.eup %2714 }
 0x724   :  { %v1610_v58 = vadd.f32 1.0, %v2715_v57  ;;  %v2717_v1 = vpop.eup %2716 }
 0x725   :  { %v1612_v8 = vadd.f32 1.0, %v2717_v1  ;;  %v2719_v15 = vpop.eup %2718 }
 0x726   :  { %v1611_v2 = vmul.f32 0.5, %v1610_v58  ;;  %v2721_v34 = vpop.eup %2720 }
 0x727   :  { %v1613_v18 = vmul.f32 0.5, %v1612_v8  ;;  %v1614_v39 = vadd.f32 1.0, %v2721_v34 }
 0x728   :  { %v1617_v25 = vmul.f32 %v2719_v15, %v1611_v2 }
 0x729   :  { %v1616_v26 = vmul.f32 %v1613_v18, %v3355_v45  ;;  %v1615_v48 = vmul.f32 0.5, %v1614_v39 }
 0x72b   :  { %v3405_v32 = vadd.f32 %v1617_v25, %v1616_v26 }
 0x72d   :  { %2722 = vtanh.f32 %v3405_v32 }
 0x737   :  { %v2723_v55 = vpop.eup %2722 }
 0x738   :  { %v1620_v56 = vmul.f32 %v2723_v55, %v1615_v48 }
 0x73a   :  { %1691 = vmatmul.mubr.f32.vlgmr.msra.gmra.mrb[14].mxu0 %v1620_v56  ;;  %1762 = vmatmul.mubr.f32.vlgmr.msra.gmra.mrb[14].mxu1 %v1620_v56 }
 0x73b   :  { %2554 = vmatpush3.bf16.msra.mxu0 %v2551_v17  ;;  %2015 = vmatprep.mubr.f32.mxu0 %v3128_v20  ;;  %v1805_v20 = vld [vmem:[%s3492_s4 + $0x48] sm:$0xff] }
 0x73c   :  { %2556 = vmatprep.subr.bf16.mxu0 %v2555_v63  ;;  %v2567_v14 = vpack.c.bf16 %v1805_v20, %v1804_v10 }
 0x73f   :  { %2558 = vmatpush3.bf16.msra.mxu0 %v2555_v63 }
 0x740   :  { %2560 = vmatprep.subr.bf16.mxu0 %v2559_v52 }
 0x743   :  { %2562 = vmatpush3.bf16.msra.mxu0 %v2559_v52 }
 0x744   :  { %2564 = vmatprep.subr.bf16.mxu0 %v2563_v11 }
 0x747   :  { %2566 = vmatpush3.bf16.msra.mxu0 %v2563_v11 }
 0x748   :  { %2568 = vmatprep.subr.bf16.mxu0 %v2567_v14 }
 0x74b   :  { %2570 = vmatpush3.bf16.msra.mxu0 %v2567_v14 }
 0x74c   :  { %2572 = vmatprep.subr.bf16.mxu0 %v2571_v28 }
 0x74f   :  { %2574 = vmatpush3.bf16.msra.mxu0 %v2571_v28 }
 0x750   :  { %2576 = vmatprep.subr.bf16.mxu0 %v2575_v12 }
 0x753   :  { %2578 = vmatpush3.bf16.msra.mxu0 %v2575_v12 }
 0x754   :  { %2580 = vmatprep.subr.bf16.mxu0 %v2579_v36 }
 0x757   :  { %2582 = vmatpush3.bf16.msra.mxu0 %v2579_v36 }
 0x75a   :  { %2016 = vmatmul.mubr.f32.vlgmr.msra.gmra.mrb[16].mxu0 %v3174_v13 }
 0x75b   :  { %2018 = vmatprep.mubr.f32.mxu0 %v3220_v7 }
 0x75e   :  { %2019 = vmatmul.mubr.f32.gmra.mrb[18].mxu0 %v3266_v5 }
 0x75f   :  { %2021 = vmatprep.mubr.f32.mxu0 %v3312_v59 }
 0x762   :  { %2022 = vmatmul.mubr.f32.gmra.mrb[20].mxu0 %v3358_v4 }
 0x763   :  { %2024 = vmatprep.mubr.f32.mxu0 %v1620_v56 }
 0x80d   :  { %v1692_v37 = vpop.f32.mrb[14].mxu0  ;;  %v1763_v41 = vpop.f32.mrb[14].mxu1 }
 0x80e   :  { %v2599_v42 = vadd.f32 %v1692_v37, %v3113_v21  ;;  %v1694_v45 = vpop.f32.mrb[15].mxu0  ;;  %v1765_v46 = vpop.f32.mrb[15].mxu1  ;;  %v2615_v7 = vadd.f32 %v1763_v41, %v3122_v49 }
 0x80f   :  { %v2600_v54 = vadd.f32 %v1694_v45, %v3115_v22  ;;  %v2616_v13 = vadd.f32 %v1765_v46, %v3119_v38  ;;  %v1958_v38 = vld [vmem:[%s3493_s5] ss:$0 sm:$0xff] }
 0x810   :  { %2724 = vtanh.f32 %v2599_v42 }
 0x811   :  { %2726 = vtanh.f32 %v2600_v54 }
 0x812   :  { %2728 = vtanh.f32 %v2616_v13 }
 0x813   :  { %2730 = vtanh.f32 %v2615_v7 }
 0x81a   :  { %v2725_v5 = vpop.eup %2724 }
 0x81b   :  { %v1776_v59 = vadd.f32 1.0, %v2725_v5  ;;  %v2727_v60 = vpop.eup %2726 }
 0x81c   :  { %v1778_v4 = vadd.f32 1.0, %v2727_v60  ;;  %v2729_v0 = vpop.eup %2728 }
 0x81d   :  { %v1777_v61 = vmul.f32 0.5, %v1776_v59  ;;  %v2731_v22 = vpop.eup %2730 }
 0x81e   :  { %v1779_v16 = vmul.f32 0.5, %v1778_v4  ;;  %v1780_v24 = vadd.f32 1.0, %v2731_v22 }
 0x81f   :  { %v1783_v21 = vmul.f32 %v2729_v0, %v1777_v61 }
 0x820   :  { %v1782_v17 = vmul.f32 %v1779_v16, %v3405_v32  ;;  %v1781_v30 = vmul.f32 0.5, %v1780_v24 }
 0x822   :  { %v1784_v23 = vadd.f32 %v1783_v21, %v1782_v17 }
 0x824   :  { %2732 = vtanh.f32 %v1784_v23 }
 0x82d   :  { %v2017_v49 = vpop.f32.mrb[16].mxu0 }
 0x82e   :  { %v1891_v33 = vadd.f32 %v2017_v49, %v1958_v38  ;;  %v1885_v43 = vpop.f32.mrb[17].mxu0  ;;  %v2733_v44 = vpop.eup %2732 }
 0x82f   :  { %v1886_v50 = vadd.f32 %v1958_v38, %v1885_v43  ;;  %v1786_v51 = vmul.f32 %v2733_v44, %v1781_v30 }
 0x830   :  { %1925 = vst [vmem:[%s3494_s6 + $0x8] sm:$0xff] %v1891_v33 }
 0x831   :  { %1924 = vst [vmem:[%s3494_s6] sm:$0xff] %v1886_v50  ;;  %v2020_v57 = vpop.f32.mrb[18].mxu0  ;;  %2025 = vmatmul.mubr.f32.gmra.mrb[22].mxu0 %v1786_v51 }
 0x832   :  { %v1901_v58 = vadd.f32 %v2020_v57, %v1958_v38  ;;  %v1895_v1 = vpop.f32.mrb[19].mxu0 }
 0x833   :  { %v1896_v2 = vadd.f32 %v1958_v38, %v1895_v1 }
 0x834   :  { %1927 = vst [vmem:[%s3494_s6 + $0x18] sm:$0xff] %v1901_v58 }
 0x835   :  { %1926 = vst [vmem:[%s3494_s6 + $0x10] sm:$0xff] %v1896_v2  ;;  %v2023_v8 = vpop.f32.mrb[20].mxu0 }
 0x836   :  { %v1911_v15 = vadd.f32 %v2023_v8, %v1958_v38  ;;  %v1905_v18 = vpop.f32.mrb[21].mxu0 }
 0x837   :  { %v1906_v25 = vadd.f32 %v1958_v38, %v1905_v18 }
 0x838   :  { %1929 = vst [vmem:[%s3494_s6 + $0x28] sm:$0xff] %v1911_v15 }
 0x839   :  { %1928 = vst [vmem:[%s3494_s6 + $0x20] sm:$0xff] %v1906_v25 }
 0x904   :  { %v2026_v26 = vpop.f32.mrb[22].mxu0 }
 0x905   :  { %v1921_v32 = vadd.f32 %v2026_v26, %v1958_v38  ;;  %v1915_v34 = vpop.f32.mrb[23].mxu0 }
 0x906   :  { %v1916_v39 = vadd.f32 %v1958_v38, %v1915_v34 }
 0x907   :  { %1931 = vst [vmem:[%s3494_s6 + $0x38] sm:$0xff] %v1921_v32 }
 0x908   :  { %1930 = vst [vmem:[%s3494_s6 + $0x30] sm:$0xff] %v1916_v39 }
 0x909   :  { %1936 = vsyncpa [#allocation5], 1 }
 0x90a   :  { %1937 = vsyncpa [#allocation7], 1 }

</bundles_post_ra>
